<compile_context>
chip_gen: v5e
topology: v5e:2x2
jax: 0.10.0
libtpu: 0.0.40
codegen_flags: <defaults>
</compile_context>

<pallas_src>
import jax
import jax.numpy as jnp
from jax.experimental import pallas as pl
from jax.experimental.pallas import tpu as pltpu


def _make_lstm_kernel(num_layers, seq_len, batch, hidden_dim):
    """Builds a Pallas kernel that runs a multi-layer LSTM over the whole sequence.

    Ref order:
      inputs : [x_2d,
                w_ih0_T (I,4H), w_hh0_T (H,4H), bias0 (1,4H),
                (w_stack_T (2H,4H), bias (1,4H)) * (L-1)]
      outputs: [out_2d (S*B,H) f32, h_n (L,B,H) f32, c_n (L,B,H) f32]
    Gate-block column order is (i, f, o, g)  (permuted in the wrapper).
    """
    H = hidden_dim
    S = seq_len
    B = batch
    L = num_layers

    def lstm_cell(gates, c_prev):
        # gates: (B, 4H) f32, columns ordered i | f | o | g
        sig = jax.nn.sigmoid(gates[:, : 3 * H])       # one EUP pass over i,f,o
        g_g = jnp.tanh(gates[:, 3 * H:])              # one EUP pass over g
        i_g = sig[:, 0 * H:1 * H]
        f_g = sig[:, 1 * H:2 * H]
        o_g = sig[:, 2 * H:3 * H]
        c_new = f_g * c_prev + i_g * g_g
        h_new = o_g * jnp.tanh(c_new)
        return h_new, c_new

    def kernel(*refs):
        x_ref = refs[0]                                        # (S*B, I) bf16
        w_ih0_ref, w_hh0_ref, b0_ref = refs[1:4]
        stack_refs = refs[4:4 + 2 * (L - 1)]
        out_ref, hn_ref, cn_ref = refs[4 + 2 * (L - 1):]

        # Hoisted layer-0 input projection for ALL timesteps at once (one big
        # MXU matmul, off the serial h-chain), combined bias folded in.
        x_proj0 = jnp.dot(x_ref[...], w_ih0_ref[...],
                          preferred_element_type=jnp.float32) + b0_ref[...]

        w_hh0 = w_hh0_ref[...]                                 # (H, 4H)  bf16
        w_stk = [stack_refs[2 * i][...] for i in range(L - 1)]       # (2H, 4H)
        b_stk = [stack_refs[2 * i + 1][...] for i in range(L - 1)]   # (1, 4H)

        h = [jnp.zeros((B, H), jnp.float32) for _ in range(L)]
        c = [jnp.zeros((B, H), jnp.float32) for _ in range(L)]
        below = [[None] * S for _ in range(L)]   # traced per-(layer, t) outputs

        # Wavefront schedule over (layer, time): slot w runs layer l at
        # timestep t = w - l.  Within a slot the L cell updates are mutually
        # independent, so the scheduler can overlap their MXU/EUP work.
        for w in range(S + L - 1):
            for l in range(L):
                t = w - l
                if not (0 <= t < S):
                    continue
                if l == 0:
                    gates = x_proj0[t * B:(t + 1) * B, :] + jnp.dot(
                        h[0].astype(jnp.bfloat16), w_hh0,
                        preferred_element_type=jnp.float32)
                else:
                    # Fused input+recurrent projection for layers >= 1:
                    # [h_below_t ; h_prev] (B, 2H) @ [w_ih_T ; w_hh_T] (2H, 4H)
                    inp = jnp.concatenate([below[l - 1][t], h[l]],
                                          axis=1).astype(jnp.bfloat16)
                    gates = jnp.dot(inp, w_stk[l - 1],
                                    preferred_element_type=jnp.float32) + b_stk[l - 1]

                h_new, c_new = lstm_cell(gates, c[l])
                h[l], c[l] = h_new, c_new
                below[l][t] = h_new
                if l == L - 1:
                    # Per-step direct store: off the critical chain, no
                    # end-of-layer concatenate / sublane relayout.
                    # TODO(synk): batch 4 steps into an (8, H) sublane-full
                    #             store / lane-dense layout once B*S grows.
                    out_ref[t * B:(t + 1) * B, :] = h_new

        for l in range(L):
            hn_ref[l, :, :] = h[l]
            cn_ref[l, :, :] = c[l]

    return kernel


def _permute_gate_cols(w_t, H):
    """Permute the 4H gate-block columns from PyTorch order (i,f,g,o) to
    (i,f,o,g) so sigmoid covers a contiguous [0:3H] slab and tanh [3H:4H]."""
    i = w_t[..., 0 * H:1 * H]
    f = w_t[..., 1 * H:2 * H]
    g = w_t[..., 2 * H:3 * H]
    o = w_t[..., 3 * H:4 * H]
    return jnp.concatenate([i, f, o, g], axis=-1)


def encoder_forward_pallas(x, params):
    """x: (B, S, I) float32 (batch_first, like PyTorch). params: list of per-layer
    dicts with PyTorch-shaped weights w_ih (4H,in), w_hh (4H,H), b_ih (4H,), b_hh (4H,)."""
    B, S, I = x.shape
    L = len(params)
    H = params[0]["w_hh"].shape[1]

    # time-major, flattened over (t, b); bf16 inputs, f32 accumulation in-kernel.
    x_2d = jnp.transpose(x, (1, 0, 2)).reshape(S * B, I).astype(jnp.bfloat16)

    flat_inputs = [x_2d]
    flops = 0
    bytes_accessed = x_2d.size * 2
    for layer, p in enumerate(params):
        in_dim = p["w_ih"].shape[1]
        w_ih_t = _permute_gate_cols(jnp.transpose(p["w_ih"]), H).astype(jnp.bfloat16)
        w_hh_t = _permute_gate_cols(jnp.transpose(p["w_hh"]), H).astype(jnp.bfloat16)
        bias = _permute_gate_cols(
            (p["b_ih"] + p["b_hh"]).reshape(1, -1), H).astype(jnp.float32)
        if layer == 0:
            flat_inputs += [w_ih_t, w_hh_t, bias]
            flops += 2 * S * B * in_dim * 4 * H + 2 * S * B * H * 4 * H
        else:
            # Stacked [w_ih_T ; w_hh_T] for the fused per-step matmul.
            flat_inputs += [jnp.concatenate([w_ih_t, w_hh_t], axis=0), bias]
            flops += 2 * S * B * (2 * H) * 4 * H
        bytes_accessed += (in_dim * 4 * H + H * 4 * H) * 2 + 4 * H * 4
    bytes_accessed += S * B * H * 4 + 2 * L * B * H * 4
    transcendentals = L * S * B * 5 * H   # sigmoid(3H) + tanh(g) + tanh(c)

    kernel = _make_lstm_kernel(L, S, B, H)
    out_2d, h_n, c_n = pl.pallas_call(
        kernel,
        out_shape=(
            jax.ShapeDtypeStruct((S * B, H), jnp.float32),
            jax.ShapeDtypeStruct((L, B, H), jnp.float32),
            jax.ShapeDtypeStruct((L, B, H), jnp.float32),
        ),
        # Everything is tiny: bring each array fully into VMEM, no grid.
        in_specs=[pl.BlockSpec(memory_space=pltpu.MemorySpace.VMEM)] * len(flat_inputs),
        out_specs=(
            pl.BlockSpec(memory_space=pltpu.MemorySpace.VMEM),
            pl.BlockSpec(memory_space=pltpu.MemorySpace.VMEM),
            pl.BlockSpec(memory_space=pltpu.MemorySpace.VMEM),
        ),
        cost_estimate=pl.CostEstimate(
            flops=flops,
            transcendentals=transcendentals,
            bytes_accessed=bytes_accessed,
        ),
        compiler_params=pltpu.CompilerParams(vmem_limit_bytes=32 * 1024 * 1024),
    )(*flat_inputs)

    output = jnp.transpose(out_2d.reshape(S, B, H), (1, 0, 2))   # (B, S, H)
    return output, (h_n, c_n)


def lstm_reference(x, params):
    """Pure-JAX reference with identical math (PyTorch nn.LSTM eval semantics, f32)."""
    B, S, _ = x.shape
    layer_in = x.astype(jnp.float32)
    hs, cs = [], []
    for p in params:
        H = p["w_hh"].shape[1]
        h = jnp.zeros((B, H), jnp.float32)
        c = jnp.zeros((B, H), jnp.float32)
        outs = []
        for t in range(S):
            xt = layer_in[:, t, :]
            gates = xt @ p["w_ih"].T + h @ p["w_hh"].T + p["b_ih"] + p["b_hh"]
            i_g = jax.nn.sigmoid(gates[:, 0 * H:1 * H])
            f_g = jax.nn.sigmoid(gates[:, 1 * H:2 * H])
            g_g = jnp.tanh(gates[:, 2 * H:3 * H])
            o_g = jax.nn.sigmoid(gates[:, 3 * H:4 * H])
            c = f_g * c + i_g * g_g
            h = o_g * jnp.tanh(c)
            outs.append(h)
        layer_in = jnp.stack(outs, axis=1)
        hs.append(h)
        cs.append(c)
    return layer_in, (jnp.stack(hs, 0), jnp.stack(cs, 0))


def init_params(key, input_dim, hidden_dim, num_layers):
    """Deterministic init mirroring nn.LSTM parameter shapes (uniform(-k, k), k=1/sqrt(H))."""
    k = 1.0 / jnp.sqrt(jnp.float32(hidden_dim))
    params = []
    for layer in range(num_layers):
        in_dim = input_dim if layer == 0 else hidden_dim
        key, k1, k2, k3, k4 = jax.random.split(key, 5)
        params.append({
            "w_ih": jax.random.uniform(k1, (4 * hidden_dim, in_dim), jnp.float32, -k, k),
            "w_hh": jax.random.uniform(k2, (4 * hidden_dim, hidden_dim), jnp.float32, -k, k),
            "b_ih": jax.random.uniform(k3, (4 * hidden_dim,), jnp.float32, -k, k),
            "b_hh": jax.random.uniform(k4, (4 * hidden_dim,), jnp.float32, -k, k),
        })
    return params


if __name__ == "__main__":
    # Encoder('lstm', input_dim=16, hidden_dim=32, hidden_layers=2, recurrent_dropout=0.0)
    B, S, I, H, L = 2, 8, 16, 32, 2

    key = jax.random.PRNGKey(0)
    key, kx = jax.random.split(key)
    x = jax.random.normal(kx, (B, S, I), jnp.float32)
    params = init_params(key, I, H, L)

    output, (h_n, c_n) = encoder_forward_pallas(x, params)
    output = jax.block_until_ready(output)
    h_n = jax.block_until_ready(h_n)
    c_n = jax.block_until_ready(c_n)

    assert output.shape == (B, S, H)
    assert h_n.shape == (L, B, H) and c_n.shape == (L, B, H)

    ref_out, (ref_h, ref_c) = lstm_reference(x, params)
    assert jnp.allclose(output, ref_out, atol=2e-2, rtol=2e-2)
    assert jnp.allclose(h_n, ref_h, atol=2e-2, rtol=2e-2)
    assert jnp.allclose(c_n, ref_c, atol=2e-2, rtol=2e-2)

    print("KERNEL_OK")
</pallas_src>

<mosaic_0001>
module attributes {stable_mosaic.version = 11 : i64} {
  func.func @kernel(%arg0: memref<16x16xbf16, #tpu.memory_space<vmem>>, %arg1: memref<16x128xbf16, #tpu.memory_space<vmem>>, %arg2: memref<32x128xbf16, #tpu.memory_space<vmem>>, %arg3: memref<1x128xf32, #tpu.memory_space<vmem>>, %arg4: memref<64x128xbf16, #tpu.memory_space<vmem>>, %arg5: memref<1x128xf32, #tpu.memory_space<vmem>>, %arg6: memref<16x32xf32, #tpu.memory_space<vmem>>, %arg7: memref<2x2x32xf32, #tpu.memory_space<vmem>>, %arg8: memref<2x2x32xf32, #tpu.memory_space<vmem>>) attributes {dimension_semantics = [], scalar_prefetch = 0 : i64, scratch_operands = 0 : i64, tpu.core_type = #tpu.core_type<tc>} {
    %c0 = arith.constant 0 : index
    %c0_0 = arith.constant 0 : index
    %0 = vector.load %arg0[%c0, %c0_0] : memref<16x16xbf16, #tpu.memory_space<vmem>>, vector<16x16xbf16>
    %c0_1 = arith.constant 0 : index
    %c0_2 = arith.constant 0 : index
    %1 = vector.load %arg1[%c0_1, %c0_2] : memref<16x128xbf16, #tpu.memory_space<vmem>>, vector<16x128xbf16>
    %cst = arith.constant dense<0.000000e+00> : vector<16x128xf32>
    %2 = tpu.matmul %0, %1, %cst {dimension_numbers = #tpu.dot_dimension_numbers<[1], [0], [0], [1], [0, 0, 1, 1], [], []>} : vector<16x16xbf16>, vector<16x128xbf16>, vector<16x128xf32> -> vector<16x128xf32>
    %c0_3 = arith.constant 0 : index
    %c0_4 = arith.constant 0 : index
    %3 = vector.load %arg3[%c0_3, %c0_4] : memref<1x128xf32, #tpu.memory_space<vmem>>, vector<1x128xf32>
    %4 = vector.broadcast %3 : vector<1x128xf32> to vector<16x128xf32>
    %5 = arith.addf %2, %4 : vector<16x128xf32>
    %c0_5 = arith.constant 0 : index
    %c0_6 = arith.constant 0 : index
    %6 = vector.load %arg2[%c0_5, %c0_6] : memref<32x128xbf16, #tpu.memory_space<vmem>>, vector<32x128xbf16>
    %c0_7 = arith.constant 0 : index
    %c0_8 = arith.constant 0 : index
    %7 = vector.load %arg4[%c0_7, %c0_8] : memref<64x128xbf16, #tpu.memory_space<vmem>>, vector<64x128xbf16>
    %c0_9 = arith.constant 0 : index
    %c0_10 = arith.constant 0 : index
    %8 = vector.load %arg5[%c0_9, %c0_10] : memref<1x128xf32, #tpu.memory_space<vmem>>, vector<1x128xf32>
    %cst_11 = arith.constant 0.000000e+00 : f32
    %9 = vector.broadcast %cst_11 : f32 to vector<2x32xf32>
    %cst_12 = arith.constant 0.000000e+00 : f32
    %10 = vector.broadcast %cst_12 : f32 to vector<2x32xf32>
    %cst_13 = arith.constant 0.000000e+00 : f32
    %11 = vector.broadcast %cst_13 : f32 to vector<2x32xf32>
    %cst_14 = arith.constant 0.000000e+00 : f32
    %12 = vector.broadcast %cst_14 : f32 to vector<2x32xf32>
    %13 = vector.extract_strided_slice %5 {offsets = [0, 0], sizes = [2, 128], strides = [1, 1]} : vector<16x128xf32> to vector<2x128xf32>
    %14 = arith.truncf %9 : vector<2x32xf32> to vector<2x32xbf16>
    %cst_15 = arith.constant dense<0.000000e+00> : vector<2x128xf32>
    %15 = tpu.matmul %14, %6, %cst_15 {dimension_numbers = #tpu.dot_dimension_numbers<[1], [0], [0], [1], [0, 0, 1, 1], [], []>} : vector<2x32xbf16>, vector<32x128xbf16>, vector<2x128xf32> -> vector<2x128xf32>
    %16 = arith.addf %13, %15 : vector<2x128xf32>
    %17 = vector.extract_strided_slice %16 {offsets = [0, 0], sizes = [2, 96], strides = [1, 1]} : vector<2x128xf32> to vector<2x96xf32>
    %18 = arith.negf %17 : vector<2x96xf32>
    %19 = math.exp %18 : vector<2x96xf32>
    %cst_16 = arith.constant 1.000000e+00 : f32
    %20 = vector.broadcast %cst_16 : f32 to vector<2x96xf32>
    %21 = arith.addf %20, %19 : vector<2x96xf32>
    %22 = arith.divf %20, %21 : vector<2x96xf32>
    %23 = vector.extract_strided_slice %16 {offsets = [0, 96], sizes = [2, 32], strides = [1, 1]} : vector<2x128xf32> to vector<2x32xf32>
    %24 = math.tanh %23 : vector<2x32xf32>
    %25 = vector.extract_strided_slice %22 {offsets = [0, 0], sizes = [2, 32], strides = [1, 1]} : vector<2x96xf32> to vector<2x32xf32>
    %26 = vector.extract_strided_slice %22 {offsets = [0, 32], sizes = [2, 32], strides = [1, 1]} : vector<2x96xf32> to vector<2x32xf32>
    %27 = vector.extract_strided_slice %22 {offsets = [0, 64], sizes = [2, 32], strides = [1, 1]} : vector<2x96xf32> to vector<2x32xf32>
    %28 = arith.mulf %26, %11 : vector<2x32xf32>
    %29 = arith.mulf %25, %24 : vector<2x32xf32>
    %30 = arith.addf %28, %29 : vector<2x32xf32>
    %31 = math.tanh %30 : vector<2x32xf32>
    %32 = arith.mulf %27, %31 : vector<2x32xf32>
    %33 = vector.extract_strided_slice %5 {offsets = [2, 0], sizes = [2, 128], strides = [1, 1]} : vector<16x128xf32> to vector<2x128xf32>
    %34 = arith.truncf %32 : vector<2x32xf32> to vector<2x32xbf16>
    %cst_17 = arith.constant dense<0.000000e+00> : vector<2x128xf32>
    %35 = tpu.matmul %34, %6, %cst_17 {dimension_numbers = #tpu.dot_dimension_numbers<[1], [0], [0], [1], [0, 0, 1, 1], [], []>} : vector<2x32xbf16>, vector<32x128xbf16>, vector<2x128xf32> -> vector<2x128xf32>
    %36 = arith.addf %33, %35 : vector<2x128xf32>
    %37 = vector.extract_strided_slice %36 {offsets = [0, 0], sizes = [2, 96], strides = [1, 1]} : vector<2x128xf32> to vector<2x96xf32>
    %38 = arith.negf %37 : vector<2x96xf32>
    %39 = math.exp %38 : vector<2x96xf32>
    %cst_18 = arith.constant 1.000000e+00 : f32
    %40 = vector.broadcast %cst_18 : f32 to vector<2x96xf32>
    %41 = arith.addf %40, %39 : vector<2x96xf32>
    %42 = arith.divf %40, %41 : vector<2x96xf32>
    %43 = vector.extract_strided_slice %36 {offsets = [0, 96], sizes = [2, 32], strides = [1, 1]} : vector<2x128xf32> to vector<2x32xf32>
    %44 = math.tanh %43 : vector<2x32xf32>
    %45 = vector.extract_strided_slice %42 {offsets = [0, 0], sizes = [2, 32], strides = [1, 1]} : vector<2x96xf32> to vector<2x32xf32>
    %46 = vector.extract_strided_slice %42 {offsets = [0, 32], sizes = [2, 32], strides = [1, 1]} : vector<2x96xf32> to vector<2x32xf32>
    %47 = vector.extract_strided_slice %42 {offsets = [0, 64], sizes = [2, 32], strides = [1, 1]} : vector<2x96xf32> to vector<2x32xf32>
    %48 = arith.mulf %46, %30 : vector<2x32xf32>
    %49 = arith.mulf %45, %44 : vector<2x32xf32>
    %50 = arith.addf %48, %49 : vector<2x32xf32>
    %51 = math.tanh %50 : vector<2x32xf32>
    %52 = arith.mulf %47, %51 : vector<2x32xf32>
    %53 = tpu.concatenate %32, %10 in 1 : vector<2x32xf32>, vector<2x32xf32> -> vector<2x64xf32>
    %54 = arith.truncf %53 : vector<2x64xf32> to vector<2x64xbf16>
    %cst_19 = arith.constant dense<0.000000e+00> : vector<2x128xf32>
    %55 = tpu.matmul %54, %7, %cst_19 {dimension_numbers = #tpu.dot_dimension_numbers<[1], [0], [0], [1], [0, 0, 1, 1], [], []>} : vector<2x64xbf16>, vector<64x128xbf16>, vector<2x128xf32> -> vector<2x128xf32>
    %56 = vector.broadcast %8 : vector<1x128xf32> to vector<2x128xf32>
    %57 = arith.addf %55, %56 : vector<2x128xf32>
    %58 = vector.extract_strided_slice %57 {offsets = [0, 0], sizes = [2, 96], strides = [1, 1]} : vector<2x128xf32> to vector<2x96xf32>
    %59 = arith.negf %58 : vector<2x96xf32>
    %60 = math.exp %59 : vector<2x96xf32>
    %cst_20 = arith.constant 1.000000e+00 : f32
    %61 = vector.broadcast %cst_20 : f32 to vector<2x96xf32>
    %62 = arith.addf %61, %60 : vector<2x96xf32>
    %63 = arith.divf %61, %62 : vector<2x96xf32>
    %64 = vector.extract_strided_slice %57 {offsets = [0, 96], sizes = [2, 32], strides = [1, 1]} : vector<2x128xf32> to vector<2x32xf32>
    %65 = math.tanh %64 : vector<2x32xf32>
    %66 = vector.extract_strided_slice %63 {offsets = [0, 0], sizes = [2, 32], strides = [1, 1]} : vector<2x96xf32> to vector<2x32xf32>
    %67 = vector.extract_strided_slice %63 {offsets = [0, 32], sizes = [2, 32], strides = [1, 1]} : vector<2x96xf32> to vector<2x32xf32>
    %68 = vector.extract_strided_slice %63 {offsets = [0, 64], sizes = [2, 32], strides = [1, 1]} : vector<2x96xf32> to vector<2x32xf32>
    %69 = arith.mulf %67, %12 : vector<2x32xf32>
    %70 = arith.mulf %66, %65 : vector<2x32xf32>
    %71 = arith.addf %69, %70 : vector<2x32xf32>
    %72 = math.tanh %71 : vector<2x32xf32>
    %73 = arith.mulf %68, %72 : vector<2x32xf32>
    %c0_21 = arith.constant 0 : index
    %c0_22 = arith.constant 0 : index
    %74 = vector.load %arg6[%c0_21, %c0_22] : memref<16x32xf32, #tpu.memory_space<vmem>>, vector<2x32xf32>
    tpu.vector_store %arg6[%c0_21, %c0_22], %73 {strides = array<i32>} : memref<16x32xf32, #tpu.memory_space<vmem>>, vector<2x32xf32>,
    %75 = vector.extract_strided_slice %5 {offsets = [4, 0], sizes = [2, 128], strides = [1, 1]} : vector<16x128xf32> to vector<2x128xf32>
    %76 = arith.truncf %52 : vector<2x32xf32> to vector<2x32xbf16>
    %cst_23 = arith.constant dense<0.000000e+00> : vector<2x128xf32>
    %77 = tpu.matmul %76, %6, %cst_23 {dimension_numbers = #tpu.dot_dimension_numbers<[1], [0], [0], [1], [0, 0, 1, 1], [], []>} : vector<2x32xbf16>, vector<32x128xbf16>, vector<2x128xf32> -> vector<2x128xf32>
    %78 = arith.addf %75, %77 : vector<2x128xf32>
    %79 = vector.extract_strided_slice %78 {offsets = [0, 0], sizes = [2, 96], strides = [1, 1]} : vector<2x128xf32> to vector<2x96xf32>
    %80 = arith.negf %79 : vector<2x96xf32>
    %81 = math.exp %80 : vector<2x96xf32>
    %cst_24 = arith.constant 1.000000e+00 : f32
    %82 = vector.broadcast %cst_24 : f32 to vector<2x96xf32>
    %83 = arith.addf %82, %81 : vector<2x96xf32>
    %84 = arith.divf %82, %83 : vector<2x96xf32>
    %85 = vector.extract_strided_slice %78 {offsets = [0, 96], sizes = [2, 32], strides = [1, 1]} : vector<2x128xf32> to vector<2x32xf32>
    %86 = math.tanh %85 : vector<2x32xf32>
    %87 = vector.extract_strided_slice %84 {offsets = [0, 0], sizes = [2, 32], strides = [1, 1]} : vector<2x96xf32> to vector<2x32xf32>
    %88 = vector.extract_strided_slice %84 {offsets = [0, 32], sizes = [2, 32], strides = [1, 1]} : vector<2x96xf32> to vector<2x32xf32>
    %89 = vector.extract_strided_slice %84 {offsets = [0, 64], sizes = [2, 32], strides = [1, 1]} : vector<2x96xf32> to vector<2x32xf32>
    %90 = arith.mulf %88, %50 : vector<2x32xf32>
    %91 = arith.mulf %87, %86 : vector<2x32xf32>
    %92 = arith.addf %90, %91 : vector<2x32xf32>
    %93 = math.tanh %92 : vector<2x32xf32>
    %94 = arith.mulf %89, %93 : vector<2x32xf32>
    %95 = tpu.concatenate %52, %73 in 1 : vector<2x32xf32>, vector<2x32xf32> -> vector<2x64xf32>
    %96 = arith.truncf %95 : vector<2x64xf32> to vector<2x64xbf16>
    %cst_25 = arith.constant dense<0.000000e+00> : vector<2x128xf32>
    %97 = tpu.matmul %96, %7, %cst_25 {dimension_numbers = #tpu.dot_dimension_numbers<[1], [0], [0], [1], [0, 0, 1, 1], [], []>} : vector<2x64xbf16>, vector<64x128xbf16>, vector<2x128xf32> -> vector<2x128xf32>
    %98 = vector.broadcast %8 : vector<1x128xf32> to vector<2x128xf32>
    %99 = arith.addf %97, %98 : vector<2x128xf32>
    %100 = vector.extract_strided_slice %99 {offsets = [0, 0], sizes = [2, 96], strides = [1, 1]} : vector<2x128xf32> to vector<2x96xf32>
    %101 = arith.negf %100 : vector<2x96xf32>
    %102 = math.exp %101 : vector<2x96xf32>
    %cst_26 = arith.constant 1.000000e+00 : f32
    %103 = vector.broadcast %cst_26 : f32 to vector<2x96xf32>
    %104 = arith.addf %103, %102 : vector<2x96xf32>
    %105 = arith.divf %103, %104 : vector<2x96xf32>
    %106 = vector.extract_strided_slice %99 {offsets = [0, 96], sizes = [2, 32], strides = [1, 1]} : vector<2x128xf32> to vector<2x32xf32>
    %107 = math.tanh %106 : vector<2x32xf32>
    %108 = vector.extract_strided_slice %105 {offsets = [0, 0], sizes = [2, 32], strides = [1, 1]} : vector<2x96xf32> to vector<2x32xf32>
    %109 = vector.extract_strided_slice %105 {offsets = [0, 32], sizes = [2, 32], strides = [1, 1]} : vector<2x96xf32> to vector<2x32xf32>
    %110 = vector.extract_strided_slice %105 {offsets = [0, 64], sizes = [2, 32], strides = [1, 1]} : vector<2x96xf32> to vector<2x32xf32>
    %111 = arith.mulf %109, %71 : vector<2x32xf32>
    %112 = arith.mulf %108, %107 : vector<2x32xf32>
    %113 = arith.addf %111, %112 : vector<2x32xf32>
    %114 = math.tanh %113 : vector<2x32xf32>
    %115 = arith.mulf %110, %114 : vector<2x32xf32>
    %c2 = arith.constant 2 : index
    %c0_27 = arith.constant 0 : index
    %116 = vector.load %arg6[%c2, %c0_27] : memref<16x32xf32, #tpu.memory_space<vmem>>, vector<2x32xf32>
    tpu.vector_store %arg6[%c2, %c0_27], %115 {strides = array<i32>} : memref<16x32xf32, #tpu.memory_space<vmem>>, vector<2x32xf32>,
    %117 = vector.extract_strided_slice %5 {offsets = [6, 0], sizes = [2, 128], strides = [1, 1]} : vector<16x128xf32> to vector<2x128xf32>
    %118 = arith.truncf %94 : vector<2x32xf32> to vector<2x32xbf16>
    %cst_28 = arith.constant dense<0.000000e+00> : vector<2x128xf32>
    %119 = tpu.matmul %118, %6, %cst_28 {dimension_numbers = #tpu.dot_dimension_numbers<[1], [0], [0], [1], [0, 0, 1, 1], [], []>} : vector<2x32xbf16>, vector<32x128xbf16>, vector<2x128xf32> -> vector<2x128xf32>
    %120 = arith.addf %117, %119 : vector<2x128xf32>
    %121 = vector.extract_strided_slice %120 {offsets = [0, 0], sizes = [2, 96], strides = [1, 1]} : vector<2x128xf32> to vector<2x96xf32>
    %122 = arith.negf %121 : vector<2x96xf32>
    %123 = math.exp %122 : vector<2x96xf32>
    %cst_29 = arith.constant 1.000000e+00 : f32
    %124 = vector.broadcast %cst_29 : f32 to vector<2x96xf32>
    %125 = arith.addf %124, %123 : vector<2x96xf32>
    %126 = arith.divf %124, %125 : vector<2x96xf32>
    %127 = vector.extract_strided_slice %120 {offsets = [0, 96], sizes = [2, 32], strides = [1, 1]} : vector<2x128xf32> to vector<2x32xf32>
    %128 = math.tanh %127 : vector<2x32xf32>
    %129 = vector.extract_strided_slice %126 {offsets = [0, 0], sizes = [2, 32], strides = [1, 1]} : vector<2x96xf32> to vector<2x32xf32>
    %130 = vector.extract_strided_slice %126 {offsets = [0, 32], sizes = [2, 32], strides = [1, 1]} : vector<2x96xf32> to vector<2x32xf32>
    %131 = vector.extract_strided_slice %126 {offsets = [0, 64], sizes = [2, 32], strides = [1, 1]} : vector<2x96xf32> to vector<2x32xf32>
    %132 = arith.mulf %130, %92 : vector<2x32xf32>
    %133 = arith.mulf %129, %128 : vector<2x32xf32>
    %134 = arith.addf %132, %133 : vector<2x32xf32>
    %135 = math.tanh %134 : vector<2x32xf32>
    %136 = arith.mulf %131, %135 : vector<2x32xf32>
    %137 = tpu.concatenate %94, %115 in 1 : vector<2x32xf32>, vector<2x32xf32> -> vector<2x64xf32>
    %138 = arith.truncf %137 : vector<2x64xf32> to vector<2x64xbf16>
    %cst_30 = arith.constant dense<0.000000e+00> : vector<2x128xf32>
    %139 = tpu.matmul %138, %7, %cst_30 {dimension_numbers = #tpu.dot_dimension_numbers<[1], [0], [0], [1], [0, 0, 1, 1], [], []>} : vector<2x64xbf16>, vector<64x128xbf16>, vector<2x128xf32> -> vector<2x128xf32>
    %140 = vector.broadcast %8 : vector<1x128xf32> to vector<2x128xf32>
    %141 = arith.addf %139, %140 : vector<2x128xf32>
    %142 = vector.extract_strided_slice %141 {offsets = [0, 0], sizes = [2, 96], strides = [1, 1]} : vector<2x128xf32> to vector<2x96xf32>
    %143 = arith.negf %142 : vector<2x96xf32>
    %144 = math.exp %143 : vector<2x96xf32>
    %cst_31 = arith.constant 1.000000e+00 : f32
    %145 = vector.broadcast %cst_31 : f32 to vector<2x96xf32>
    %146 = arith.addf %145, %144 : vector<2x96xf32>
    %147 = arith.divf %145, %146 : vector<2x96xf32>
    %148 = vector.extract_strided_slice %141 {offsets = [0, 96], sizes = [2, 32], strides = [1, 1]} : vector<2x128xf32> to vector<2x32xf32>
    %149 = math.tanh %148 : vector<2x32xf32>
    %150 = vector.extract_strided_slice %147 {offsets = [0, 0], sizes = [2, 32], strides = [1, 1]} : vector<2x96xf32> to vector<2x32xf32>
    %151 = vector.extract_strided_slice %147 {offsets = [0, 32], sizes = [2, 32], strides = [1, 1]} : vector<2x96xf32> to vector<2x32xf32>
    %152 = vector.extract_strided_slice %147 {offsets = [0, 64], sizes = [2, 32], strides = [1, 1]} : vector<2x96xf32> to vector<2x32xf32>
    %153 = arith.mulf %151, %113 : vector<2x32xf32>
    %154 = arith.mulf %150, %149 : vector<2x32xf32>
    %155 = arith.addf %153, %154 : vector<2x32xf32>
    %156 = math.tanh %155 : vector<2x32xf32>
    %157 = arith.mulf %152, %156 : vector<2x32xf32>
    %c4 = arith.constant 4 : index
    %c0_32 = arith.constant 0 : index
    %158 = vector.load %arg6[%c4, %c0_32] : memref<16x32xf32, #tpu.memory_space<vmem>>, vector<2x32xf32>
    tpu.vector_store %arg6[%c4, %c0_32], %157 {strides = array<i32>} : memref<16x32xf32, #tpu.memory_space<vmem>>, vector<2x32xf32>,
    %159 = vector.extract_strided_slice %5 {offsets = [8, 0], sizes = [2, 128], strides = [1, 1]} : vector<16x128xf32> to vector<2x128xf32>
    %160 = arith.truncf %136 : vector<2x32xf32> to vector<2x32xbf16>
    %cst_33 = arith.constant dense<0.000000e+00> : vector<2x128xf32>
    %161 = tpu.matmul %160, %6, %cst_33 {dimension_numbers = #tpu.dot_dimension_numbers<[1], [0], [0], [1], [0, 0, 1, 1], [], []>} : vector<2x32xbf16>, vector<32x128xbf16>, vector<2x128xf32> -> vector<2x128xf32>
    %162 = arith.addf %159, %161 : vector<2x128xf32>
    %163 = vector.extract_strided_slice %162 {offsets = [0, 0], sizes = [2, 96], strides = [1, 1]} : vector<2x128xf32> to vector<2x96xf32>
    %164 = arith.negf %163 : vector<2x96xf32>
    %165 = math.exp %164 : vector<2x96xf32>
    %cst_34 = arith.constant 1.000000e+00 : f32
    %166 = vector.broadcast %cst_34 : f32 to vector<2x96xf32>
    %167 = arith.addf %166, %165 : vector<2x96xf32>
    %168 = arith.divf %166, %167 : vector<2x96xf32>
    %169 = vector.extract_strided_slice %162 {offsets = [0, 96], sizes = [2, 32], strides = [1, 1]} : vector<2x128xf32> to vector<2x32xf32>
    %170 = math.tanh %169 : vector<2x32xf32>
    %171 = vector.extract_strided_slice %168 {offsets = [0, 0], sizes = [2, 32], strides = [1, 1]} : vector<2x96xf32> to vector<2x32xf32>
    %172 = vector.extract_strided_slice %168 {offsets = [0, 32], sizes = [2, 32], strides = [1, 1]} : vector<2x96xf32> to vector<2x32xf32>
    %173 = vector.extract_strided_slice %168 {offsets = [0, 64], sizes = [2, 32], strides = [1, 1]} : vector<2x96xf32> to vector<2x32xf32>
    %174 = arith.mulf %172, %134 : vector<2x32xf32>
    %175 = arith.mulf %171, %170 : vector<2x32xf32>
    %176 = arith.addf %174, %175 : vector<2x32xf32>
    %177 = math.tanh %176 : vector<2x32xf32>
    %178 = arith.mulf %173, %177 : vector<2x32xf32>
    %179 = tpu.concatenate %136, %157 in 1 : vector<2x32xf32>, vector<2x32xf32> -> vector<2x64xf32>
    %180 = arith.truncf %179 : vector<2x64xf32> to vector<2x64xbf16>
    %cst_35 = arith.constant dense<0.000000e+00> : vector<2x128xf32>
    %181 = tpu.matmul %180, %7, %cst_35 {dimension_numbers = #tpu.dot_dimension_numbers<[1], [0], [0], [1], [0, 0, 1, 1], [], []>} : vector<2x64xbf16>, vector<64x128xbf16>, vector<2x128xf32> -> vector<2x128xf32>
    %182 = vector.broadcast %8 : vector<1x128xf32> to vector<2x128xf32>
    %183 = arith.addf %181, %182 : vector<2x128xf32>
    %184 = vector.extract_strided_slice %183 {offsets = [0, 0], sizes = [2, 96], strides = [1, 1]} : vector<2x128xf32> to vector<2x96xf32>
    %185 = arith.negf %184 : vector<2x96xf32>
    %186 = math.exp %185 : vector<2x96xf32>
    %cst_36 = arith.constant 1.000000e+00 : f32
    %187 = vector.broadcast %cst_36 : f32 to vector<2x96xf32>
    %188 = arith.addf %187, %186 : vector<2x96xf32>
    %189 = arith.divf %187, %188 : vector<2x96xf32>
    %190 = vector.extract_strided_slice %183 {offsets = [0, 96], sizes = [2, 32], strides = [1, 1]} : vector<2x128xf32> to vector<2x32xf32>
    %191 = math.tanh %190 : vector<2x32xf32>
    %192 = vector.extract_strided_slice %189 {offsets = [0, 0], sizes = [2, 32], strides = [1, 1]} : vector<2x96xf32> to vector<2x32xf32>
    %193 = vector.extract_strided_slice %189 {offsets = [0, 32], sizes = [2, 32], strides = [1, 1]} : vector<2x96xf32> to vector<2x32xf32>
    %194 = vector.extract_strided_slice %189 {offsets = [0, 64], sizes = [2, 32], strides = [1, 1]} : vector<2x96xf32> to vector<2x32xf32>
    %195 = arith.mulf %193, %155 : vector<2x32xf32>
    %196 = arith.mulf %192, %191 : vector<2x32xf32>
    %197 = arith.addf %195, %196 : vector<2x32xf32>
    %198 = math.tanh %197 : vector<2x32xf32>
    %199 = arith.mulf %194, %198 : vector<2x32xf32>
    %c6 = arith.constant 6 : index
    %c0_37 = arith.constant 0 : index
    %200 = vector.load %arg6[%c6, %c0_37] : memref<16x32xf32, #tpu.memory_space<vmem>>, vector<2x32xf32>
    tpu.vector_store %arg6[%c6, %c0_37], %199 {strides = array<i32>} : memref<16x32xf32, #tpu.memory_space<vmem>>, vector<2x32xf32>,
    %201 = vector.extract_strided_slice %5 {offsets = [10, 0], sizes = [2, 128], strides = [1, 1]} : vector<16x128xf32> to vector<2x128xf32>
    %202 = arith.truncf %178 : vector<2x32xf32> to vector<2x32xbf16>
    %cst_38 = arith.constant dense<0.000000e+00> : vector<2x128xf32>
    %203 = tpu.matmul %202, %6, %cst_38 {dimension_numbers = #tpu.dot_dimension_numbers<[1], [0], [0], [1], [0, 0, 1, 1], [], []>} : vector<2x32xbf16>, vector<32x128xbf16>, vector<2x128xf32> -> vector<2x128xf32>
    %204 = arith.addf %201, %203 : vector<2x128xf32>
    %205 = vector.extract_strided_slice %204 {offsets = [0, 0], sizes = [2, 96], strides = [1, 1]} : vector<2x128xf32> to vector<2x96xf32>
    %206 = arith.negf %205 : vector<2x96xf32>
    %207 = math.exp %206 : vector<2x96xf32>
    %cst_39 = arith.constant 1.000000e+00 : f32
    %208 = vector.broadcast %cst_39 : f32 to vector<2x96xf32>
    %209 = arith.addf %208, %207 : vector<2x96xf32>
    %210 = arith.divf %208, %209 : vector<2x96xf32>
    %211 = vector.extract_strided_slice %204 {offsets = [0, 96], sizes = [2, 32], strides = [1, 1]} : vector<2x128xf32> to vector<2x32xf32>
    %212 = math.tanh %211 : vector<2x32xf32>
    %213 = vector.extract_strided_slice %210 {offsets = [0, 0], sizes = [2, 32], strides = [1, 1]} : vector<2x96xf32> to vector<2x32xf32>
    %214 = vector.extract_strided_slice %210 {offsets = [0, 32], sizes = [2, 32], strides = [1, 1]} : vector<2x96xf32> to vector<2x32xf32>
    %215 = vector.extract_strided_slice %210 {offsets = [0, 64], sizes = [2, 32], strides = [1, 1]} : vector<2x96xf32> to vector<2x32xf32>
    %216 = arith.mulf %214, %176 : vector<2x32xf32>
    %217 = arith.mulf %213, %212 : vector<2x32xf32>
    %218 = arith.addf %216, %217 : vector<2x32xf32>
    %219 = math.tanh %218 : vector<2x32xf32>
    %220 = arith.mulf %215, %219 : vector<2x32xf32>
    %221 = tpu.concatenate %178, %199 in 1 : vector<2x32xf32>, vector<2x32xf32> -> vector<2x64xf32>
    %222 = arith.truncf %221 : vector<2x64xf32> to vector<2x64xbf16>
    %cst_40 = arith.constant dense<0.000000e+00> : vector<2x128xf32>
    %223 = tpu.matmul %222, %7, %cst_40 {dimension_numbers = #tpu.dot_dimension_numbers<[1], [0], [0], [1], [0, 0, 1, 1], [], []>} : vector<2x64xbf16>, vector<64x128xbf16>, vector<2x128xf32> -> vector<2x128xf32>
    %224 = vector.broadcast %8 : vector<1x128xf32> to vector<2x128xf32>
    %225 = arith.addf %223, %224 : vector<2x128xf32>
    %226 = vector.extract_strided_slice %225 {offsets = [0, 0], sizes = [2, 96], strides = [1, 1]} : vector<2x128xf32> to vector<2x96xf32>
    %227 = arith.negf %226 : vector<2x96xf32>
    %228 = math.exp %227 : vector<2x96xf32>
    %cst_41 = arith.constant 1.000000e+00 : f32
    %229 = vector.broadcast %cst_41 : f32 to vector<2x96xf32>
    %230 = arith.addf %229, %228 : vector<2x96xf32>
    %231 = arith.divf %229, %230 : vector<2x96xf32>
    %232 = vector.extract_strided_slice %225 {offsets = [0, 96], sizes = [2, 32], strides = [1, 1]} : vector<2x128xf32> to vector<2x32xf32>
    %233 = math.tanh %232 : vector<2x32xf32>
    %234 = vector.extract_strided_slice %231 {offsets = [0, 0], sizes = [2, 32], strides = [1, 1]} : vector<2x96xf32> to vector<2x32xf32>
    %235 = vector.extract_strided_slice %231 {offsets = [0, 32], sizes = [2, 32], strides = [1, 1]} : vector<2x96xf32> to vector<2x32xf32>
    %236 = vector.extract_strided_slice %231 {offsets = [0, 64], sizes = [2, 32], strides = [1, 1]} : vector<2x96xf32> to vector<2x32xf32>
    %237 = arith.mulf %235, %197 : vector<2x32xf32>
    %238 = arith.mulf %234, %233 : vector<2x32xf32>
    %239 = arith.addf %237, %238 : vector<2x32xf32>
    %240 = math.tanh %239 : vector<2x32xf32>
    %241 = arith.mulf %236, %240 : vector<2x32xf32>
    %c8 = arith.constant 8 : index
    %c0_42 = arith.constant 0 : index
    %242 = vector.load %arg6[%c8, %c0_42] : memref<16x32xf32, #tpu.memory_space<vmem>>, vector<2x32xf32>
    tpu.vector_store %arg6[%c8, %c0_42], %241 {strides = array<i32>} : memref<16x32xf32, #tpu.memory_space<vmem>>, vector<2x32xf32>,
    %243 = vector.extract_strided_slice %5 {offsets = [12, 0], sizes = [2, 128], strides = [1, 1]} : vector<16x128xf32> to vector<2x128xf32>
    %244 = arith.truncf %220 : vector<2x32xf32> to vector<2x32xbf16>
    %cst_43 = arith.constant dense<0.000000e+00> : vector<2x128xf32>
    %245 = tpu.matmul %244, %6, %cst_43 {dimension_numbers = #tpu.dot_dimension_numbers<[1], [0], [0], [1], [0, 0, 1, 1], [], []>} : vector<2x32xbf16>, vector<32x128xbf16>, vector<2x128xf32> -> vector<2x128xf32>
    %246 = arith.addf %243, %245 : vector<2x128xf32>
    %247 = vector.extract_strided_slice %246 {offsets = [0, 0], sizes = [2, 96], strides = [1, 1]} : vector<2x128xf32> to vector<2x96xf32>
    %248 = arith.negf %247 : vector<2x96xf32>
    %249 = math.exp %248 : vector<2x96xf32>
    %cst_44 = arith.constant 1.000000e+00 : f32
    %250 = vector.broadcast %cst_44 : f32 to vector<2x96xf32>
    %251 = arith.addf %250, %249 : vector<2x96xf32>
    %252 = arith.divf %250, %251 : vector<2x96xf32>
    %253 = vector.extract_strided_slice %246 {offsets = [0, 96], sizes = [2, 32], strides = [1, 1]} : vector<2x128xf32> to vector<2x32xf32>
    %254 = math.tanh %253 : vector<2x32xf32>
    %255 = vector.extract_strided_slice %252 {offsets = [0, 0], sizes = [2, 32], strides = [1, 1]} : vector<2x96xf32> to vector<2x32xf32>
    %256 = vector.extract_strided_slice %252 {offsets = [0, 32], sizes = [2, 32], strides = [1, 1]} : vector<2x96xf32> to vector<2x32xf32>
    %257 = vector.extract_strided_slice %252 {offsets = [0, 64], sizes = [2, 32], strides = [1, 1]} : vector<2x96xf32> to vector<2x32xf32>
    %258 = arith.mulf %256, %218 : vector<2x32xf32>
    %259 = arith.mulf %255, %254 : vector<2x32xf32>
    %260 = arith.addf %258, %259 : vector<2x32xf32>
    %261 = math.tanh %260 : vector<2x32xf32>
    %262 = arith.mulf %257, %261 : vector<2x32xf32>
    %263 = tpu.concatenate %220, %241 in 1 : vector<2x32xf32>, vector<2x32xf32> -> vector<2x64xf32>
    %264 = arith.truncf %263 : vector<2x64xf32> to vector<2x64xbf16>
    %cst_45 = arith.constant dense<0.000000e+00> : vector<2x128xf32>
    %265 = tpu.matmul %264, %7, %cst_45 {dimension_numbers = #tpu.dot_dimension_numbers<[1], [0], [0], [1], [0, 0, 1, 1], [], []>} : vector<2x64xbf16>, vector<64x128xbf16>, vector<2x128xf32> -> vector<2x128xf32>
    %266 = vector.broadcast %8 : vector<1x128xf32> to vector<2x128xf32>
    %267 = arith.addf %265, %266 : vector<2x128xf32>
    %268 = vector.extract_strided_slice %267 {offsets = [0, 0], sizes = [2, 96], strides = [1, 1]} : vector<2x128xf32> to vector<2x96xf32>
    %269 = arith.negf %268 : vector<2x96xf32>
    %270 = math.exp %269 : vector<2x96xf32>
    %cst_46 = arith.constant 1.000000e+00 : f32
    %271 = vector.broadcast %cst_46 : f32 to vector<2x96xf32>
    %272 = arith.addf %271, %270 : vector<2x96xf32>
    %273 = arith.divf %271, %272 : vector<2x96xf32>
    %274 = vector.extract_strided_slice %267 {offsets = [0, 96], sizes = [2, 32], strides = [1, 1]} : vector<2x128xf32> to vector<2x32xf32>
    %275 = math.tanh %274 : vector<2x32xf32>
    %276 = vector.extract_strided_slice %273 {offsets = [0, 0], sizes = [2, 32], strides = [1, 1]} : vector<2x96xf32> to vector<2x32xf32>
    %277 = vector.extract_strided_slice %273 {offsets = [0, 32], sizes = [2, 32], strides = [1, 1]} : vector<2x96xf32> to vector<2x32xf32>
    %278 = vector.extract_strided_slice %273 {offsets = [0, 64], sizes = [2, 32], strides = [1, 1]} : vector<2x96xf32> to vector<2x32xf32>
    %279 = arith.mulf %277, %239 : vector<2x32xf32>
    %280 = arith.mulf %276, %275 : vector<2x32xf32>
    %281 = arith.addf %279, %280 : vector<2x32xf32>
    %282 = math.tanh %281 : vector<2x32xf32>
    %283 = arith.mulf %278, %282 : vector<2x32xf32>
    %c10 = arith.constant 10 : index
    %c0_47 = arith.constant 0 : index
    %284 = vector.load %arg6[%c10, %c0_47] : memref<16x32xf32, #tpu.memory_space<vmem>>, vector<2x32xf32>
    tpu.vector_store %arg6[%c10, %c0_47], %283 {strides = array<i32>} : memref<16x32xf32, #tpu.memory_space<vmem>>, vector<2x32xf32>,
    %285 = vector.extract_strided_slice %5 {offsets = [14, 0], sizes = [2, 128], strides = [1, 1]} : vector<16x128xf32> to vector<2x128xf32>
    %286 = arith.truncf %262 : vector<2x32xf32> to vector<2x32xbf16>
    %cst_48 = arith.constant dense<0.000000e+00> : vector<2x128xf32>
    %287 = tpu.matmul %286, %6, %cst_48 {dimension_numbers = #tpu.dot_dimension_numbers<[1], [0], [0], [1], [0, 0, 1, 1], [], []>} : vector<2x32xbf16>, vector<32x128xbf16>, vector<2x128xf32> -> vector<2x128xf32>
    %288 = arith.addf %285, %287 : vector<2x128xf32>
    %289 = vector.extract_strided_slice %288 {offsets = [0, 0], sizes = [2, 96], strides = [1, 1]} : vector<2x128xf32> to vector<2x96xf32>
    %290 = arith.negf %289 : vector<2x96xf32>
    %291 = math.exp %290 : vector<2x96xf32>
    %cst_49 = arith.constant 1.000000e+00 : f32
    %292 = vector.broadcast %cst_49 : f32 to vector<2x96xf32>
    %293 = arith.addf %292, %291 : vector<2x96xf32>
    %294 = arith.divf %292, %293 : vector<2x96xf32>
    %295 = vector.extract_strided_slice %288 {offsets = [0, 96], sizes = [2, 32], strides = [1, 1]} : vector<2x128xf32> to vector<2x32xf32>
    %296 = math.tanh %295 : vector<2x32xf32>
    %297 = vector.extract_strided_slice %294 {offsets = [0, 0], sizes = [2, 32], strides = [1, 1]} : vector<2x96xf32> to vector<2x32xf32>
    %298 = vector.extract_strided_slice %294 {offsets = [0, 32], sizes = [2, 32], strides = [1, 1]} : vector<2x96xf32> to vector<2x32xf32>
    %299 = vector.extract_strided_slice %294 {offsets = [0, 64], sizes = [2, 32], strides = [1, 1]} : vector<2x96xf32> to vector<2x32xf32>
    %300 = arith.mulf %298, %260 : vector<2x32xf32>
    %301 = arith.mulf %297, %296 : vector<2x32xf32>
    %302 = arith.addf %300, %301 : vector<2x32xf32>
    %303 = math.tanh %302 : vector<2x32xf32>
    %304 = arith.mulf %299, %303 : vector<2x32xf32>
    %305 = tpu.concatenate %262, %283 in 1 : vector<2x32xf32>, vector<2x32xf32> -> vector<2x64xf32>
    %306 = arith.truncf %305 : vector<2x64xf32> to vector<2x64xbf16>
    %cst_50 = arith.constant dense<0.000000e+00> : vector<2x128xf32>
    %307 = tpu.matmul %306, %7, %cst_50 {dimension_numbers = #tpu.dot_dimension_numbers<[1], [0], [0], [1], [0, 0, 1, 1], [], []>} : vector<2x64xbf16>, vector<64x128xbf16>, vector<2x128xf32> -> vector<2x128xf32>
    %308 = vector.broadcast %8 : vector<1x128xf32> to vector<2x128xf32>
    %309 = arith.addf %307, %308 : vector<2x128xf32>
    %310 = vector.extract_strided_slice %309 {offsets = [0, 0], sizes = [2, 96], strides = [1, 1]} : vector<2x128xf32> to vector<2x96xf32>
    %311 = arith.negf %310 : vector<2x96xf32>
    %312 = math.exp %311 : vector<2x96xf32>
    %cst_51 = arith.constant 1.000000e+00 : f32
    %313 = vector.broadcast %cst_51 : f32 to vector<2x96xf32>
    %314 = arith.addf %313, %312 : vector<2x96xf32>
    %315 = arith.divf %313, %314 : vector<2x96xf32>
    %316 = vector.extract_strided_slice %309 {offsets = [0, 96], sizes = [2, 32], strides = [1, 1]} : vector<2x128xf32> to vector<2x32xf32>
    %317 = math.tanh %316 : vector<2x32xf32>
    %318 = vector.extract_strided_slice %315 {offsets = [0, 0], sizes = [2, 32], strides = [1, 1]} : vector<2x96xf32> to vector<2x32xf32>
    %319 = vector.extract_strided_slice %315 {offsets = [0, 32], sizes = [2, 32], strides = [1, 1]} : vector<2x96xf32> to vector<2x32xf32>
    %320 = vector.extract_strided_slice %315 {offsets = [0, 64], sizes = [2, 32], strides = [1, 1]} : vector<2x96xf32> to vector<2x32xf32>
    %321 = arith.mulf %319, %281 : vector<2x32xf32>
    %322 = arith.mulf %318, %317 : vector<2x32xf32>
    %323 = arith.addf %321, %322 : vector<2x32xf32>
    %324 = math.tanh %323 : vector<2x32xf32>
    %325 = arith.mulf %320, %324 : vector<2x32xf32>
    %c12 = arith.constant 12 : index
    %c0_52 = arith.constant 0 : index
    %326 = vector.load %arg6[%c12, %c0_52] : memref<16x32xf32, #tpu.memory_space<vmem>>, vector<2x32xf32>
    tpu.vector_store %arg6[%c12, %c0_52], %325 {strides = array<i32>} : memref<16x32xf32, #tpu.memory_space<vmem>>, vector<2x32xf32>,
    %327 = tpu.concatenate %304, %325 in 1 : vector<2x32xf32>, vector<2x32xf32> -> vector<2x64xf32>
    %328 = arith.truncf %327 : vector<2x64xf32> to vector<2x64xbf16>
    %cst_53 = arith.constant dense<0.000000e+00> : vector<2x128xf32>
    %329 = tpu.matmul %328, %7, %cst_53 {dimension_numbers = #tpu.dot_dimension_numbers<[1], [0], [0], [1], [0, 0, 1, 1], [], []>} : vector<2x64xbf16>, vector<64x128xbf16>, vector<2x128xf32> -> vector<2x128xf32>
    %330 = vector.broadcast %8 : vector<1x128xf32> to vector<2x128xf32>
    %331 = arith.addf %329, %330 : vector<2x128xf32>
    %332 = vector.extract_strided_slice %331 {offsets = [0, 0], sizes = [2, 96], strides = [1, 1]} : vector<2x128xf32> to vector<2x96xf32>
    %333 = arith.negf %332 : vector<2x96xf32>
    %334 = math.exp %333 : vector<2x96xf32>
    %cst_54 = arith.constant 1.000000e+00 : f32
    %335 = vector.broadcast %cst_54 : f32 to vector<2x96xf32>
    %336 = arith.addf %335, %334 : vector<2x96xf32>
    %337 = arith.divf %335, %336 : vector<2x96xf32>
    %338 = vector.extract_strided_slice %331 {offsets = [0, 96], sizes = [2, 32], strides = [1, 1]} : vector<2x128xf32> to vector<2x32xf32>
    %339 = math.tanh %338 : vector<2x32xf32>
    %340 = vector.extract_strided_slice %337 {offsets = [0, 0], sizes = [2, 32], strides = [1, 1]} : vector<2x96xf32> to vector<2x32xf32>
    %341 = vector.extract_strided_slice %337 {offsets = [0, 32], sizes = [2, 32], strides = [1, 1]} : vector<2x96xf32> to vector<2x32xf32>
    %342 = vector.extract_strided_slice %337 {offsets = [0, 64], sizes = [2, 32], strides = [1, 1]} : vector<2x96xf32> to vector<2x32xf32>
    %343 = arith.mulf %341, %323 : vector<2x32xf32>
    %344 = arith.mulf %340, %339 : vector<2x32xf32>
    %345 = arith.addf %343, %344 : vector<2x32xf32>
    %346 = math.tanh %345 : vector<2x32xf32>
    %347 = arith.mulf %342, %346 : vector<2x32xf32>
    %c14 = arith.constant 14 : index
    %c0_55 = arith.constant 0 : index
    %348 = vector.load %arg6[%c14, %c0_55] : memref<16x32xf32, #tpu.memory_space<vmem>>, vector<2x32xf32>
    tpu.vector_store %arg6[%c14, %c0_55], %347 {strides = array<i32>} : memref<16x32xf32, #tpu.memory_space<vmem>>, vector<2x32xf32>,
    %c0_56 = arith.constant 0 : index
    %c0_57 = arith.constant 0 : index
    %c0_58 = arith.constant 0 : index
    %349 = vector.load %arg7[%c0_56, %c0_57, %c0_58] : memref<2x2x32xf32, #tpu.memory_space<vmem>>, vector<1x2x32xf32>
    %350 = vector.shape_cast %349 : vector<1x2x32xf32> to vector<2x32xf32>
    %351 = vector.shape_cast %304 : vector<2x32xf32> to vector<1x2x32xf32>
    tpu.vector_store %arg7[%c0_56, %c0_57, %c0_58], %351 {strides = array<i32>} : memref<2x2x32xf32, #tpu.memory_space<vmem>>, vector<1x2x32xf32>,
    %c0_59 = arith.constant 0 : index
    %c0_60 = arith.constant 0 : index
    %c0_61 = arith.constant 0 : index
    %352 = vector.load %arg8[%c0_59, %c0_60, %c0_61] : memref<2x2x32xf32, #tpu.memory_space<vmem>>, vector<1x2x32xf32>
    %353 = vector.shape_cast %352 : vector<1x2x32xf32> to vector<2x32xf32>
    %354 = vector.shape_cast %302 : vector<2x32xf32> to vector<1x2x32xf32>
    tpu.vector_store %arg8[%c0_59, %c0_60, %c0_61], %354 {strides = array<i32>} : memref<2x2x32xf32, #tpu.memory_space<vmem>>, vector<1x2x32xf32>,
    %c1 = arith.constant 1 : index
    %c0_62 = arith.constant 0 : index
    %c0_63 = arith.constant 0 : index
    %355 = vector.load %arg7[%c1, %c0_62, %c0_63] : memref<2x2x32xf32, #tpu.memory_space<vmem>>, vector<1x2x32xf32>
    %356 = vector.shape_cast %355 : vector<1x2x32xf32> to vector<2x32xf32>
    %357 = vector.shape_cast %347 : vector<2x32xf32> to vector<1x2x32xf32>
    tpu.vector_store %arg7[%c1, %c0_62, %c0_63], %357 {strides = array<i32>} : memref<2x2x32xf32, #tpu.memory_space<vmem>>, vector<1x2x32xf32>,
    %c1_64 = arith.constant 1 : index
    %c0_65 = arith.constant 0 : index
    %c0_66 = arith.constant 0 : index
    %358 = vector.load %arg8[%c1_64, %c0_65, %c0_66] : memref<2x2x32xf32, #tpu.memory_space<vmem>>, vector<1x2x32xf32>
    %359 = vector.shape_cast %358 : vector<1x2x32xf32> to vector<2x32xf32>
    %360 = vector.shape_cast %345 : vector<2x32xf32> to vector<1x2x32xf32>
    tpu.vector_store %arg8[%c1_64, %c0_65, %c0_66], %360 {strides = array<i32>} : memref<2x2x32xf32, #tpu.memory_space<vmem>>, vector<1x2x32xf32>,
    return
  }
}

</mosaic_0001>

<bundles_post_ra>
// kernel: tpu_custom_call.1
= control target key start
LH: loop header
LB: loop body
LE: loop exit
PB: predicated region body
PF: predicated region fallthrough
CT: control target
= control target key end

     0   :  { %14 = vsyncpa [#allocation3], 0  ;;  %s2094_s0 = inlined_call_operand.hbm [shape: bf16[16,16], index: 0, kind: input, shape index: {}]   ;;  %s2095_s1 = inlined_call_operand.hbm [shape: bf16[16,128], index: 1, kind: input, shape index: {}]   ;;  %s2096_s2 = inlined_call_operand.hbm [shape: bf16[32,128], index: 2, kind: input, shape index: {}]   ;;  %s2097_s3 = inlined_call_operand.vmem [shape: f32[1,128], index: 3, kind: input, shape index: {}]   ;;  %s2098_s4 = inlined_call_operand.hbm [shape: bf16[64,128], index: 4, kind: input, shape index: {}]   ;;  %s2099_s5 = inlined_call_operand.vmem [shape: f32[1,128], index: 5, kind: input, shape index: {}]   ;;  %s2100_s6 = inlined_call_operand.hbm [shape: f32[16,32], index: 6, kind: output, shape index: {0}]   ;;  %s2101_s7 = inlined_call_operand.hbm [shape: f32[2,2,32], index: 7, kind: output, shape index: {1}]   ;;  %s2102_s8 = inlined_call_operand.hbm [shape: f32[2,2,32], index: 8, kind: output, shape index: {2}]  }
   0x1   :  { %15 = vsyncpa [#allocation6], 0 }
   0x2   :  { %16 = vsyncpa [#allocation9], 0 }
   0x3   :  { %17 = vsyncpa [#allocation4], 0 }
   0x4   :  { %18 = vsyncpa [#allocation12], 0  ;;  %s36_s29 = sshll.u32 %s2095_s1, 4  ;;  %s1706_s30 = smov [#allocation5]   ;;  %s37_s29 = int_to_ptr.hbm [resolvable:$true] %s36_s29 }
   0x5   :  { %s38_s9 = sshll.u32 %s1706_s30, 4  ;;  %s23_s12 = sshll.u32 %s2094_s0, 4  ;;  %s39_s9 = int_to_ptr.vmem [resolvable:$true] %s38_s9  ;;  %s24_s12 = int_to_ptr.hbm [resolvable:$true] %s23_s12 }
   0x6   :  { %s1707_s13 = smov 64   ;;  %s1708_s14 = smov 4  }
   0x7   :  { %44 = dma.hbm_to_vmem [thread:$0]  %s37_s29, 128, %s39_s9, [#allocation6], %s1707_s13, %s1707_s13, %s1708_s14  }
   0x8   :  { %s1709_s15 = smov [#allocation2]   ;;  %s49_s1 = sshll.u32 %s2096_s2, 4  ;;  %s50_s1 = int_to_ptr.hbm [resolvable:$true] %s49_s1 }
   0x9   :  { %s25_s16 = sshll.u32 %s1709_s15, 4  ;;  %s64_s0 = sshll.u32 %s2098_s4, 4  ;;  %s26_s16 = int_to_ptr.vmem [resolvable:$true] %s25_s16  ;;  %s65_s0 = int_to_ptr.hbm [resolvable:$true] %s64_s0 }
   0xa   :  { %31 = dma.hbm_to_vmem [thread:$0]  %s24_s12, 128, %s26_s16, [#allocation3], %s1707_s13, %s1707_s13, %s1708_s14  }
   0xb   :  { %s1710_s21 = smov [#allocation7]   ;;  %s1711_s23 = smov [#allocation8]  }
   0xc   :  { %s51_s22 = sshll.u32 %s1710_s21, 4  ;;  %s66_s24 = sshll.u32 %s1711_s23, 4  ;;  %s52_s22 = int_to_ptr.vmem [resolvable:$true] %s51_s22  ;;  %s67_s24 = int_to_ptr.vmem [resolvable:$true] %s66_s24 }
   0xd   :  { %57 = dma.hbm_to_vmem [thread:$0]  %s50_s1, 256, %s52_s22, [#allocation6], %s1707_s13, %s1707_s13, %s1708_s14  }
   0xe   :  { %72 = dma.hbm_to_vmem [thread:$0]  %s65_s0, 512, %s67_s24, [#allocation9], %s1707_s13, %s1707_s13, %s1708_s14  }
   0xf   :  { %1696 = dma.done.wait [#allocation3], 128  }
  0x10   :  { %1697 = vsyncadd [#allocation3], 4294967168 }
  0x11   :  { %1698 = dma.done.wait [#allocation6], 384  }
  0x12   :  { %1699 = vsyncadd [#allocation6], 4294966912 }
  0x13   :  { %1700 = dma.done.wait [#allocation9], 512  }
  0x14   :  { %1701 = vsyncadd [#allocation9], 4294966784  ;;  %v1375_v0 = vld [vmem:[#allocation5] sm:$0xff]  ;;  %v1786_v1 = vld [vmem:[#allocation7 + $0x8] sm:$0xff]  ;;  %vm111_vm0 = vcmask 130048   ;;  %v1712_v4 = vmov 0  }
  0x15   :  { %v1374_v2 = vld [vmem:[#allocation2] sm:$0xff]  ;;  %122 = vmatpush.bf16.msra.mxu0 %v1375_v0  ;;  %164 = vmatpush.bf16.msra.mxu1 %v1786_v1  ;;  %v1789_v3 = vld [vmem:[#allocation7] sm:$0xff]  ;;  %s1713_s25 = smov 32   ;;  %v1817_v34 = vld [vmem:[#allocation8 + $0x18] sm:$0xff]  ;;  %vm154_vm5 = vcmask 261120   ;;  %vm306_vm6 = vcmask 523264  }
  0x16   :  { %222 = vmatpush.bf16.msra.mxu2 %v1786_v1  ;;  %v1803_v5 = vld [vmem:[%s2097_s3] ss:$0 sm:$0xff]  ;;  %314 = vmatpush.bf16.msra.mxu3 %v1817_v34  ;;  %v1820_v35 = vld [vmem:[#allocation8 + $0x10] sm:$0xff]  ;;  %v1824_v36 = vld [vmem:[#allocation8 + $0x8] sm:$0xff]  ;;  %s1714_s27 = smov 96   ;;  %s1716_s9 = smov [#allocation10]  }
  0x17   :  { %v1829_v37 = vld [vmem:[#allocation8] sm:$0xff]  ;;  %s1258_s10 = sshll.u32 %s1716_s9, 4  ;;  %s1260_s14 = sshll.u32 %s2100_s6, 4  ;;  %s1259_s10 = int_to_ptr.vmem [resolvable:$true] %s1258_s10  ;;  %s1261_s14 = int_to_ptr.hbm [resolvable:$true] %s1260_s14 }
  0x18   :  { %1318 = vmatmul.msk.bf16.vlgmr.msra.gmra.mxu0 %vm111_vm0, %v1374_v2  ;;  %v1855_v47 = vld [vmem:[%s2099_s5] ss:$0 sm:$0xff]  ;;  %s1273_s16 = sshll.u32 %s2101_s7, 4  ;;  %s1717_s17 = smov 128   ;;  %s1274_s16 = int_to_ptr.hbm [resolvable:$true] %s1273_s16 }
  0x19   :  { %380 = vmatpush.bf16.msrb.mxu0 %v1786_v1  ;;  %165 = vmatpush.bf16.msra.mxu1 %v1789_v3  ;;  %s1718_s18 = smov 8   ;;  %s1719_s1 = smov 2  }
  0x1a   :  { %223 = vmatpush.bf16.msra.mxu2 %v1789_v3  ;;  %315 = vmatpush.bf16.msra.mxu3 %v1820_v35  ;;  %s1720_s6 = smov [#allocation13]   ;;  %s1286_s7 = sshll.u32 %s2102_s8, 4  ;;  %s1287_s7 = int_to_ptr.hbm [resolvable:$true] %s1286_s7 }
  0x1b   :  { %s1284_s19 = sshll.u32 %s1720_s6, 4  ;;  %s1285_s19 = int_to_ptr.vmem [resolvable:$true] %s1284_s19 }
  0x1c   :  { %166 = vmatmul.bf16.vlgmr.msra.gmra.mxu1 %v1712_v4 }
  0x1d   :  { %381 = vmatpush.bf16.msrb.mxu0 %v1789_v3  ;;  %450 = vmatpush.bf16.msrb.mxu1 %v1817_v34 }
  0x1e   :  { %515 = vmatpush.bf16.msrb.mxu2 %v1786_v1  ;;  %316 = vmatpush.bf16.msra.mxu3 %v1824_v36 }
  0x21   :  { %650 = vmatpush.bf16.msra.mxu0 %v1786_v1  ;;  %451 = vmatpush.bf16.msrb.mxu1 %v1820_v35 }
  0x22   :  { %516 = vmatpush.bf16.msrb.mxu2 %v1789_v3  ;;  %317 = vmatpush.bf16.msra.mxu3 %v1829_v37 }
  0x25   :  { %651 = vmatpush.bf16.msra.mxu0 %v1789_v3  ;;  %452 = vmatpush.bf16.msrb.mxu1 %v1824_v36 }
  0x26   :  { %585 = vmatpush.bf16.msrb.mxu3 %v1817_v34 }
  0x29   :  { %453 = vmatpush.bf16.msrb.mxu1 %v1829_v37 }
  0x2a   :  { %586 = vmatpush.bf16.msrb.mxu3 %v1820_v35 }
  0x2d   :  { %717 = vmatpush.bf16.msra.mxu1 %v1817_v34 }
  0x2e   :  { %587 = vmatpush.bf16.msrb.mxu3 %v1824_v36 }
  0x31   :  { %718 = vmatpush.bf16.msra.mxu1 %v1820_v35 }
  0x32   :  { %588 = vmatpush.bf16.msrb.mxu3 %v1829_v37 }
  0x35   :  { %719 = vmatpush.bf16.msra.mxu1 %v1824_v36 }
  0x39   :  { %720 = vmatpush.bf16.msra.mxu1 %v1829_v37 }
  0x95   :  { %v124_v6 = vpop.f32.mrf.mxu0 }
  0x96   :  { %v1806_v7 = vadd.f32 %v1803_v5, %v124_v6 }
  0x99   :  { %v167_v8 = vpop.f32.mrf.mxu1 }
  0x9a   :  { %v171_v9 = vadd.f32 %v167_v8, %v1806_v7 }
  0x9c   :  { %1399 = vtanh.f32 %v171_v9  ;;  %v1327_v12 = vmul.f32 -1.442695, %v171_v9 }
  0x9e   :  { %1401 = vpow2.f32 %v1327_v12 }
  0xa1   :  { %v169_v10 = vpop.f32.mrf.mxu1 }
  0xa2   :  { %v1400_v11 = vpop.eup %1399 }
  0xa3   :  { %194 = vrot.lane.b32.xlu0 %v1400_v11, %s1713_s25 }
  0xa4   :  { %v1402_v13 = vpop.eup %1401 }
  0xa5   :  { %v175_v14 = vadd.f32 1.0, %v1402_v13 }
  0xa7   :  { %1403 = vrcp.f32 %v175_v14  ;;  %v187_v20 = vand.u32 2147483648, %v175_v14  ;;  %vm181_vm2 = vweird.f32 %v175_v14  ;;  %v185_v21 = vand.u32 2147483647, %v175_v14 }
  0xa9   :  { %v188_v23 = vor.u32 1.1754944e-38, %v187_v20  ;;  %vm186_vm4 = vcmp.eq.f32.partialorder %v185_v21, 8.507059e+37 }
  0xad   :  { %v1404_v15 = vpop.eup %1403 }
  0xae   :  { %v177_v16 = vmul.f32 %v1404_v15, %v175_v14  ;;  %vm182_vm1 = vweird.f32 %v1404_v15 }
  0xaf   :  { %vm183_vm3 = vmor %vm181_vm2, %vm182_vm1 }
  0xb0   :  { %v178_v17 = vsub.f32 1.0, %v177_v16 }
  0xb2   :  { %v179_v18 = vmul.f32 %v1404_v15, %v178_v17 }
  0xb4   :  { %v180_v19 = vadd.f32 %v1404_v15, %v179_v18 }
  0xb6   :  { %v184_v22 = vsel %vm183_vm3, %v1404_v15, %v180_v19 }
  0xb7   :  { %v189_v25 = vsel %vm186_vm4, %v188_v23, %v184_v22 }
  0xb8   :  { %v192_v27 = vmul.f32 0.0, %v189_v25 }
 0x115   :  { %v195_v24 = vpop.permute.xlu0 %194 }
 0x116   :  { %v197_v26 = vmul.f32 %v195_v24, %v189_v25 }
 0x118   :  { %199 = vrot.lane.b32.xlu0 %v197_v26, %s1713_s25 }
 0x18a   :  { %v200_v28 = vpop.permute.xlu0 %199 }
 0x18b   :  { %v1811_v29 = vadd.f32 %v200_v28, %v192_v27 }
 0x18d   :  { %1405 = vtanh.f32 %v1811_v29  ;;  %v254_v22 = vrot.slane %v1811_v29, 6 }
 0x193   :  { %v1406_v30 = vpop.eup %1405 }
 0x194   :  { %205 = vrot.lane.b32.xlu1 %v1406_v30, %s1713_s25 }
 0x206   :  { %v206_v31 = vpop.permute.xlu1 %205 }
 0x207   :  { %v208_v32 = vmul.f32 %v206_v31, %v189_v25 }
 0x209   :  { %274 = vrot.lane.b32.xlu1 %v208_v32, %s1707_s13  ;;  %v209_v33 = vpack.c.bf16 %v208_v32, %v208_v32 }
 0x20b   :  { %211 = vrot.lane.b32.xlu2 %v209_v33, %s1707_s13 }
 0x265   :  { %v212_v38 = vpop.permute.xlu2 %211 }
 0x266   :  { %1328 = vmatmul.msk.bf16.vlgmr.msra.gmra.mxu2 %vm154_vm5, %v212_v38 }
 0x267   :  { %781 = vmatpush.bf16.msra.mxu2 %v1786_v1 }
 0x26b   :  { %782 = vmatpush.bf16.msra.mxu2 %v1789_v3 }
 0x27b   :  { %v275_v39 = vpop.permute.xlu1 %274 }
 0x27c   :  { %v277_v40 = vsel %vm154_vm5, %v275_v39, 0.0 }
 0x27d   :  { %v278_v41 = vpack.c.bf16 %v277_v40, %v277_v40 }
 0x27f   :  { %1346 = vmatmul.msk.bf16.vlgmr.msra.gmra.mxu3 %vm306_vm6, %v278_v41 }
 0x280   :  { %848 = vmatpush.bf16.msra.mxu3 %v1817_v34 }
 0x284   :  { %849 = vmatpush.bf16.msra.mxu3 %v1820_v35 }
 0x288   :  { %850 = vmatpush.bf16.msra.mxu3 %v1824_v36 }
 0x28c   :  { %851 = vmatpush.bf16.msra.mxu3 %v1829_v37 }
 0x2e9   :  { %v225_v42 = vpop.f32.mrf.mxu2 }
 0x2ea   :  { %v230_v43 = vrot.slane %v225_v42, 6 }
 0x2ec   :  { %v232_v44 = vadd.f32 %v230_v43, %v1806_v7 }
 0x2ee   :  { %1407 = vtanh.f32 %v232_v44  ;;  %v1329_v53 = vmul.f32 -1.442695, %v232_v44 }
 0x2f1   :  { %v227_v45 = vpop.f32.mrf.mxu2 }
 0x2f4   :  { %v1408_v46 = vpop.eup %1407 }
 0x2f5   :  { %258 = vrot.lane.b32.xlu0 %v1408_v46, %s1713_s25 }
 0x302   :  { %v319_v48 = vpop.f32.mrf.mxu3 }
 0x303   :  { %v320_v49 = vadd.f32 %v1855_v47, %v319_v48 }
 0x305   :  { %1409 = vtanh.f32 %v320_v49  ;;  %v1347_v52 = vmul.f32 -1.442695, %v320_v49  ;;  %v1885_v49 = vpop.f32.mrf.mxu0 }
 0x307   :  { %1411 = vpow2.f32 %v1347_v52 }
 0x308   :  { %1413 = vpow2.f32 %v1329_v53 }
 0x30a   :  { %v321_v50 = vpop.f32.mrf.mxu3 }
 0x30b   :  { %v1410_v51 = vpop.eup %1409 }
 0x30c   :  { %345 = vrot.lane.b32.xlu2 %v1410_v51, %s1713_s25 }
 0x30d   :  { %v1412_v54 = vpop.eup %1411 }
 0x30e   :  { %v1414_v55 = vpop.eup %1413  ;;  %v326_v56 = vadd.f32 1.0, %v1412_v54 }
 0x30f   :  { %v236_v57 = vadd.f32 1.0, %v1414_v55 }
 0x310   :  { %1415 = vrcp.f32 %v326_v56  ;;  %v338_v6 = vand.u32 2147483648, %v326_v56  ;;  %vm332_vm9 = vweird.f32 %v326_v56  ;;  %v336_v9 = vand.u32 2147483647, %v326_v56 }
 0x311   :  { %1417 = vrcp.f32 %v236_v57  ;;  %v248_v10 = vand.u32 2147483648, %v236_v57  ;;  %vm242_vm11 = vweird.f32 %v236_v57  ;;  %v246_v11 = vand.u32 2147483647, %v236_v57 }
 0x312   :  { %v339_v13 = vor.u32 1.1754944e-38, %v338_v6  ;;  %vm337_vm13 = vcmp.eq.f32.partialorder %v336_v9, 8.507059e+37 }
 0x313   :  { %v249_v15 = vor.u32 1.1754944e-38, %v248_v10  ;;  %vm247_vm14 = vcmp.eq.f32.partialorder %v246_v11, 8.507059e+37 }
 0x316   :  { %v1416_v58 = vpop.eup %1415 }
 0x317   :  { %v1418_v59 = vpop.eup %1417  ;;  %v328_v60 = vmul.f32 %v1416_v58, %v326_v56  ;;  %vm333_vm7 = vweird.f32 %v1416_v58 }
 0x318   :  { %v238_v61 = vmul.f32 %v1418_v59, %v236_v57  ;;  %vm243_vm8 = vweird.f32 %v1418_v59  ;;  %vm334_vm10 = vmor %vm332_vm9, %vm333_vm7 }
 0x319   :  { %v329_v62 = vsub.f32 1.0, %v328_v60  ;;  %vm244_vm12 = vmor %vm242_vm11, %vm243_vm8 }
 0x31a   :  { %v239_v63 = vsub.f32 1.0, %v238_v61 }
 0x31b   :  { %v330_v0 = vmul.f32 %v1416_v58, %v329_v62 }
 0x31c   :  { %v240_v2 = vmul.f32 %v1418_v59, %v239_v63 }
 0x31d   :  { %v331_v4 = vadd.f32 %v1416_v58, %v330_v0 }
 0x31e   :  { %v241_v8 = vadd.f32 %v1418_v59, %v240_v2 }
 0x31f   :  { %v335_v12 = vsel %vm334_vm10, %v1416_v58, %v331_v4 }
 0x320   :  { %v245_v14 = vsel %vm244_vm12, %v1418_v59, %v241_v8  ;;  %v340_v16 = vsel %vm337_vm13, %v339_v13, %v335_v12 }
 0x321   :  { %v250_v20 = vsel %vm247_vm14, %v249_v15, %v245_v14  ;;  %v343_v27 = vmul.f32 0.0, %v340_v16 }
 0x322   :  { %v256_v23 = vmul.f32 %v254_v22, %v250_v20 }
 0x366   :  { %v346_v17 = vpop.permute.xlu2 %345 }
 0x367   :  { %v348_v18 = vmul.f32 %v346_v17, %v340_v16  ;;  %v259_v19 = vpop.permute.xlu0 %258 }
 0x368   :  { %v261_v21 = vmul.f32 %v259_v19, %v250_v20 }
 0x369   :  { %350 = vrot.lane.b32.xlu1 %v348_v18, %s1713_s25 }
 0x36a   :  { %263 = vrot.lane.b32.xlu2 %v261_v21, %s1713_s25 }
 0x3c4   :  { %v264_v24 = vpop.permute.xlu2 %263 }
 0x3c5   :  { %v1862_v25 = vadd.f32 %v264_v24, %v256_v23 }
 0x3c7   :  { %1419 = vtanh.f32 %v1862_v25 }
 0x3cd   :  { %v1420_v26 = vpop.eup %1419 }
 0x3ce   :  { %269 = vrot.lane.b32.xlu1 %v1420_v26, %s1713_s25 }
 0x3db   :  { %v351_v28 = vpop.permute.xlu1 %350 }
 0x3dc   :  { %v1866_v30 = vadd.f32 %v351_v28, %v343_v27 }
 0x3de   :  { %1421 = vtanh.f32 %v1866_v30 }
 0x3e4   :  { %v1422_v31 = vpop.eup %1421 }
 0x3e5   :  { %356 = vrot.lane.b32.xlu0 %v1422_v31, %s1713_s25 }
 0x440   :  { %v270_v32 = vpop.permute.xlu1 %269 }
 0x441   :  { %v272_v29 = vmul.f32 %v270_v32, %v250_v20  ;;  %v412_v32 = vrot.slane %v1862_v25, 6 }
 0x443   :  { %432 = vrot.lane.b32.xlu2 %v272_v29, %s1707_s13  ;;  %v366_v33 = vpack.c.bf16 %v272_v29, %v272_v29 }
 0x445   :  { %v368_v38 = vrot.slane %v366_v33, 1 }
 0x447   :  { %369 = vrot.lane.b32.xlu1 %v368_v38, %s1707_s13 }
 0x457   :  { %v357_v39 = vpop.permute.xlu0 %356 }
 0x458   :  { %v1872_v40 = vmul.f32 %v357_v39, %v340_v16 }
 0x45a   :  { %v435_v41 = vrot.slane %v1872_v40, 6 }
 0x45c   :  { %436 = vrot.lane.b32.xlu0 %v435_v41, %s1714_s27 }
 0x49d   :  { %v433_v43 = vpop.permute.xlu2 %432 }
 0x4b9   :  { %v370_v42 = vpop.permute.xlu1 %369 }
 0x4ba   :  { %1348 = vmatmul.msk.bf16.vlgmr.msrb.gmra.mxu0 %vm154_vm5, %v370_v42 }
 0x4bb   :  { %913 = vmatpush.bf16.msrb.mxu0 %v1786_v1 }
 0x4bf   :  { %914 = vmatpush.bf16.msrb.mxu0 %v1789_v3 }
 0x4ce   :  { %v437_v44 = vpop.permute.xlu0 %436 }
 0x4cf   :  { %v439_v45 = vsel %vm154_vm5, %v433_v43, %v437_v44 }
 0x4d0   :  { %v440_v46 = vpack.c.bf16 %v439_v45, %v439_v45 }
 0x4d2   :  { %v442_v48 = vrot.slane %v440_v46, 1 }
 0x4d4   :  { %1350 = vmatmul.msk.bf16.vlgmr.msrb.gmra.mxu1 %vm306_vm6, %v442_v48 }
 0x4d5   :  { %983 = vmatpush.bf16.msrb.mxu1 %v1817_v34 }
 0x4d9   :  { %984 = vmatpush.bf16.msrb.mxu1 %v1820_v35 }
 0x4dd   :  { %985 = vmatpush.bf16.msrb.mxu1 %v1824_v36 }
 0x4e1   :  { %986 = vmatpush.bf16.msrb.mxu1 %v1829_v37 }
 0x537   :  { %v383_v50 = vpop.f32.mrf.mxu0 }
 0x538   :  { %v388_v51 = vrot.slane %v383_v50, 4 }
 0x53a   :  { %v390_v52 = vadd.f32 %v388_v51, %v1806_v7 }
 0x53c   :  { %1423 = vtanh.f32 %v390_v52  ;;  %v1349_v59 = vmul.f32 -1.442695, %v390_v52 }
 0x53f   :  { %v385_v53 = vpop.f32.mrf.mxu0 }
 0x542   :  { %v1424_v54 = vpop.eup %1423 }
 0x543   :  { %416 = vrot.lane.b32.xlu0 %v1424_v54, %s1713_s25 }
 0x551   :  { %v455_v55 = vpop.f32.mrf.mxu1 }
 0x552   :  { %v456_v56 = vadd.f32 %v1855_v47, %v455_v55 }
 0x554   :  { %1425 = vtanh.f32 %v456_v56  ;;  %v1351_v60 = vmul.f32 -1.442695, %v456_v56 }
 0x555   :  { %1427 = vpow2.f32 %v1349_v59 }
 0x556   :  { %1429 = vpow2.f32 %v1351_v60 }
 0x559   :  { %v457_v57 = vpop.f32.mrf.mxu1 }
 0x55a   :  { %v1426_v58 = vpop.eup %1425 }
 0x55b   :  { %481 = vrot.lane.b32.xlu2 %v1426_v58, %s1713_s25  ;;  %v1428_v61 = vpop.eup %1427 }
 0x55c   :  { %v1430_v62 = vpop.eup %1429  ;;  %v394_v63 = vadd.f32 1.0, %v1428_v61 }
 0x55d   :  { %v462_v0 = vadd.f32 1.0, %v1430_v62 }
 0x55e   :  { %1431 = vrcp.f32 %v394_v63  ;;  %vm400_vm1 = vweird.f32 %v394_v63  ;;  %v406_v16 = vand.u32 2147483648, %v394_v63  ;;  %v404_v18 = vand.u32 2147483647, %v394_v63 }
 0x55f   :  { %1433 = vrcp.f32 %v462_v0  ;;  %v474_v15 = vand.u32 2147483648, %v462_v0  ;;  %vm468_vm2 = vweird.f32 %v462_v0  ;;  %v472_v17 = vand.u32 2147483647, %v462_v0 }
 0x560   :  { %v407_v22 = vor.u32 1.1754944e-38, %v406_v16  ;;  %vm405_vm8 = vcmp.eq.f32.partialorder %v404_v18, 8.507059e+37 }
 0x561   :  { %v475_v21 = vor.u32 1.1754944e-38, %v474_v15  ;;  %vm473_vm7 = vcmp.eq.f32.partialorder %v472_v17, 8.507059e+37 }
 0x564   :  { %v1432_v2 = vpop.eup %1431 }
 0x565   :  { %v1434_v4 = vpop.eup %1433  ;;  %v396_v8 = vmul.f32 %v1432_v2, %v394_v63  ;;  %vm401_vm15 = vweird.f32 %v1432_v2 }
 0x566   :  { %v464_v6 = vmul.f32 %v1434_v4, %v462_v0  ;;  %vm469_vm0 = vweird.f32 %v1434_v4  ;;  %vm402_vm3 = vmor %vm400_vm1, %vm401_vm15 }
 0x567   :  { %v397_v10 = vsub.f32 1.0, %v396_v8  ;;  %vm470_vm4 = vmor %vm468_vm2, %vm469_vm0 }
 0x568   :  { %v465_v9 = vsub.f32 1.0, %v464_v6 }
 0x569   :  { %v398_v12 = vmul.f32 %v1432_v2, %v397_v10 }
 0x56a   :  { %v466_v11 = vmul.f32 %v1434_v4, %v465_v9 }
 0x56b   :  { %v399_v14 = vadd.f32 %v1432_v2, %v398_v12 }
 0x56c   :  { %v467_v13 = vadd.f32 %v1434_v4, %v466_v11 }
 0x56d   :  { %v403_v20 = vsel %vm402_vm3, %v1432_v2, %v399_v14 }
 0x56e   :  { %v471_v19 = vsel %vm470_vm4, %v1434_v4, %v467_v13  ;;  %v408_v27 = vsel %vm405_vm8, %v407_v22, %v403_v20 }
 0x56f   :  { %v476_v24 = vsel %vm473_vm7, %v475_v21, %v471_v19  ;;  %v414_v29 = vmul.f32 %v412_v32, %v408_v27 }
 0x570   :  { %v479_v41 = vmul.f32 %v476_v24, %v1866_v30 }
 0x5b5   :  { %v482_v23 = vpop.permute.xlu2 %481  ;;  %v417_v26 = vpop.permute.xlu0 %416 }
 0x5b6   :  { %v484_v28 = vmul.f32 %v482_v23, %v476_v24  ;;  %v419_v31 = vmul.f32 %v417_v26, %v408_v27 }
 0x5b8   :  { %486 = vrot.lane.b32.xlu1 %v484_v28, %s1713_s25  ;;  %421 = vrot.lane.b32.xlu2 %v419_v31, %s1713_s25 }
 0x612   :  { %v422_v33 = vpop.permute.xlu2 %421 }
 0x613   :  { %v1894_v38 = vadd.f32 %v422_v33, %v414_v29 }
 0x615   :  { %1435 = vtanh.f32 %v1894_v38 }
 0x61b   :  { %v1436_v39 = vpop.eup %1435 }
 0x61c   :  { %427 = vrot.lane.b32.xlu1 %v1436_v39, %s1713_s25 }
 0x62a   :  { %v487_v42 = vpop.permute.xlu1 %486 }
 0x62b   :  { %v1899_v43 = vadd.f32 %v487_v42, %v479_v41  ;;  %v547_v42 = vrot.slane %v1894_v38, 6 }
 0x62d   :  { %1437 = vtanh.f32 %v1899_v43 }
 0x633   :  { %v1438_v44 = vpop.eup %1437 }
 0x634   :  { %492 = vrot.lane.b32.xlu0 %v1438_v44, %s1713_s25 }
 0x68e   :  { %v428_v25 = vpop.permute.xlu1 %427 }
 0x68f   :  { %v430_v45 = vmul.f32 %v428_v25, %v408_v27 }
 0x691   :  { %567 = vrot.lane.b32.xlu2 %v430_v45, %s1707_s13  ;;  %v501_v46 = vpack.c.bf16 %v430_v45, %v430_v45 }
 0x693   :  { %v503_v48 = vrot.slane %v501_v46, 2 }
 0x695   :  { %504 = vrot.lane.b32.xlu1 %v503_v48, %s1707_s13 }
 0x6a6   :  { %v493_v50 = vpop.permute.xlu0 %492 }
 0x6a7   :  { %v1905_v51 = vmul.f32 %v493_v50, %v476_v24 }
 0x6a9   :  { %v570_v30 = vrot.slane %v1905_v51, 4 }
 0x6ab   :  { %571 = vrot.lane.b32.xlu0 %v570_v30, %s1714_s27 }
 0x6eb   :  { %v568_v53 = vpop.permute.xlu2 %567 }
 0x707   :  { %v505_v52 = vpop.permute.xlu1 %504 }
 0x708   :  { %1352 = vmatmul.msk.bf16.vlgmr.msrb.gmra.mxu2 %vm154_vm5, %v505_v52 }
 0x709   :  { %1048 = vmatpush.bf16.msrb.mxu2 %v1786_v1 }
 0x70d   :  { %1049 = vmatpush.bf16.msrb.mxu2 %v1789_v3 }
 0x71d   :  { %v572_v54 = vpop.permute.xlu0 %571 }
 0x71e   :  { %v574_v55 = vsel %vm154_vm5, %v568_v53, %v572_v54 }
 0x71f   :  { %v575_v56 = vpack.c.bf16 %v574_v55, %v574_v55 }
 0x721   :  { %v577_v57 = vrot.slane %v575_v56, 2 }
 0x723   :  { %1354 = vmatmul.msk.bf16.vlgmr.msrb.gmra.mxu3 %vm306_vm6, %v577_v57 }
 0x724   :  { %1118 = vmatpush.bf16.msrb.mxu3 %v1817_v34 }
 0x728   :  { %1119 = vmatpush.bf16.msrb.mxu3 %v1820_v35 }
 0x72c   :  { %1120 = vmatpush.bf16.msrb.mxu3 %v1824_v36 }
 0x730   :  { %1121 = vmatpush.bf16.msrb.mxu3 %v1829_v37 }
 0x78b   :  { %v518_v58 = vpop.f32.mrf.mxu2 }
 0x78c   :  { %v523_v1 = vrot.slane %v518_v58, 2 }
 0x78e   :  { %v525_v3 = vadd.f32 %v523_v1, %v1806_v7 }
 0x790   :  { %1439 = vtanh.f32 %v525_v3  ;;  %v1353_v2 = vmul.f32 -1.442695, %v525_v3 }
 0x793   :  { %v520_v59 = vpop.f32.mrf.mxu2 }
 0x796   :  { %v1440_v60 = vpop.eup %1439 }
 0x797   :  { %551 = vrot.lane.b32.xlu0 %v1440_v60, %s1713_s25 }
 0x7a6   :  { %v590_v61 = vpop.f32.mrf.mxu3 }
 0x7a7   :  { %v591_v62 = vadd.f32 %v1855_v47, %v590_v61 }
 0x7a9   :  { %1441 = vtanh.f32 %v591_v62  ;;  %v1355_v4 = vmul.f32 -1.442695, %v591_v62  ;;  %v1949_v62 = vadd.f32 %v1803_v5, %v1885_v49 }
 0x7aa   :  { %1443 = vpow2.f32 %v1353_v2 }
 0x7ab   :  { %1445 = vpow2.f32 %v1355_v4 }
 0x7ae   :  { %v592_v63 = vpop.f32.mrf.mxu3 }
 0x7af   :  { %v1442_v0 = vpop.eup %1441 }
 0x7b0   :  { %616 = vrot.lane.b32.xlu2 %v1442_v0, %s1713_s25  ;;  %v1444_v6 = vpop.eup %1443 }
 0x7b1   :  { %v1446_v8 = vpop.eup %1445  ;;  %v529_v7 = vadd.f32 1.0, %v1444_v6 }
 0x7b2   :  { %v597_v9 = vadd.f32 1.0, %v1446_v8 }
 0x7b3   :  { %1447 = vrcp.f32 %v529_v7  ;;  %v541_v19 = vand.u32 2147483648, %v529_v7  ;;  %vm535_vm11 = vweird.f32 %v529_v7  ;;  %v539_v21 = vand.u32 2147483647, %v529_v7 }
 0x7b4   :  { %1449 = vrcp.f32 %v597_v9  ;;  %v609_v22 = vand.u32 2147483648, %v597_v9  ;;  %vm603_vm13 = vweird.f32 %v597_v9  ;;  %v607_v23 = vand.u32 2147483647, %v597_v9 }
 0x7b5   :  { %v542_v26 = vor.u32 1.1754944e-38, %v541_v19  ;;  %vm540_vm15 = vcmp.eq.f32.partialorder %v539_v21, 8.507059e+37 }
 0x7b6   :  { %v610_v28 = vor.u32 1.1754944e-38, %v609_v22  ;;  %vm608_vm0 = vcmp.eq.f32.partialorder %v607_v23, 8.507059e+37 }
 0x7b9   :  { %v1448_v10 = vpop.eup %1447 }
 0x7ba   :  { %v1450_v11 = vpop.eup %1449  ;;  %v531_v12 = vmul.f32 %v1448_v10, %v529_v7  ;;  %vm536_vm9 = vweird.f32 %v1448_v10 }
 0x7bb   :  { %v599_v13 = vmul.f32 %v1450_v11, %v597_v9  ;;  %vm604_vm10 = vweird.f32 %v1450_v11  ;;  %vm537_vm12 = vmor %vm535_vm11, %vm536_vm9 }
 0x7bc   :  { %v532_v14 = vsub.f32 1.0, %v531_v12  ;;  %vm605_vm14 = vmor %vm603_vm13, %vm604_vm10 }
 0x7bd   :  { %v600_v15 = vsub.f32 1.0, %v599_v13 }
 0x7be   :  { %v533_v16 = vmul.f32 %v1448_v10, %v532_v14 }
 0x7bf   :  { %v601_v17 = vmul.f32 %v1450_v11, %v600_v15 }
 0x7c0   :  { %v534_v18 = vadd.f32 %v1448_v10, %v533_v16 }
 0x7c1   :  { %v602_v20 = vadd.f32 %v1450_v11, %v601_v17 }
 0x7c2   :  { %v538_v24 = vsel %vm537_vm12, %v1448_v10, %v534_v18 }
 0x7c3   :  { %v606_v27 = vsel %vm605_vm14, %v1450_v11, %v602_v20  ;;  %v543_v32 = vsel %vm540_vm15, %v542_v26, %v538_v24 }
 0x7c4   :  { %v611_v39 = vsel %vm608_vm0, %v610_v28, %v606_v27  ;;  %v549_v44 = vmul.f32 %v547_v42, %v543_v32 }
 0x7c5   :  { %v614_v48 = vmul.f32 %v611_v39, %v1899_v43 }
 0x809   :  { %v552_v31 = vpop.permute.xlu0 %551 }
 0x80a   :  { %v554_v29 = vmul.f32 %v552_v31, %v543_v32  ;;  %v617_v33 = vpop.permute.xlu2 %616 }
 0x80b   :  { %v619_v41 = vmul.f32 %v617_v33, %v611_v39 }
 0x80c   :  { %556 = vrot.lane.b32.xlu2 %v554_v29, %s1713_s25 }
 0x80d   :  { %621 = vrot.lane.b32.xlu1 %v619_v41, %s1713_s25 }
 0x866   :  { %v557_v25 = vpop.permute.xlu2 %556 }
 0x867   :  { %v1925_v45 = vadd.f32 %v557_v25, %v549_v44 }
 0x869   :  { %1451 = vtanh.f32 %v1925_v45  ;;  %v679_v42 = vrot.slane %v1925_v45, 6 }
 0x86f   :  { %v1452_v46 = vpop.eup %1451 }
 0x870   :  { %562 = vrot.lane.b32.xlu1 %v1452_v46, %s1713_s25 }
 0x87f   :  { %v622_v50 = vpop.permute.xlu1 %621 }
 0x880   :  { %v1930_v30 = vadd.f32 %v622_v50, %v614_v48 }
 0x882   :  { %1453 = vtanh.f32 %v1930_v30 }
 0x888   :  { %v1454_v52 = vpop.eup %1453 }
 0x889   :  { %627 = vrot.lane.b32.xlu0 %v1454_v52, %s1713_s25 }
 0x8e2   :  { %v563_v38 = vpop.permute.xlu1 %562 }
 0x8e3   :  { %v565_v53 = vmul.f32 %v563_v38, %v543_v32 }
 0x8e5   :  { %699 = vrot.lane.b32.xlu2 %v565_v53, %s1707_s13  ;;  %v636_v54 = vpack.c.bf16 %v565_v53, %v565_v53 }
 0x8e7   :  { %v638_v55 = vrot.slane %v636_v54, 3 }
 0x8e9   :  { %639 = vrot.lane.b32.xlu1 %v638_v55, %s1707_s13 }
 0x8fb   :  { %v628_v56 = vpop.permute.xlu0 %627 }
 0x8fc   :  { %v1936_v57 = vmul.f32 %v628_v56, %v611_v39 }
 0x8fe   :  { %v702_v43 = vrot.slane %v1936_v57, 2 }
 0x900   :  { %703 = vrot.lane.b32.xlu0 %v702_v43, %s1714_s27 }
 0x93f   :  { %v700_v1 = vpop.permute.xlu2 %699 }
 0x95b   :  { %v640_v58 = vpop.permute.xlu1 %639 }
 0x95c   :  { %1356 = vmatmul.msk.bf16.vlgmr.msra.gmra.mxu0 %vm154_vm5, %v640_v58 }
 0x95d   :  { %1188 = vmatpush.bf16.msra.mxu0 %v1817_v34 }
 0x961   :  { %1189 = vmatpush.bf16.msra.mxu0 %v1820_v35 }
 0x965   :  { %1190 = vmatpush.bf16.msra.mxu0 %v1824_v36 }
 0x969   :  { %1191 = vmatpush.bf16.msra.mxu0 %v1829_v37 }
 0x972   :  { %v704_v3 = vpop.permute.xlu0 %703 }
 0x973   :  { %v706_v59 = vsel %vm154_vm5, %v700_v1, %v704_v3 }
 0x974   :  { %v707_v60 = vpack.c.bf16 %v706_v59, %v706_v59 }
 0x976   :  { %v709_v61 = vrot.slane %v707_v60, 3 }
 0x978   :  { %1358 = vmatmul.msk.bf16.vlgmr.msra.gmra.mxu1 %vm306_vm6, %v709_v61 }
 0x9d9   :  { %v653_v63 = vpop.f32.mrf.mxu0 }
 0x9da   :  { %v657_v34 = vadd.f32 %v653_v63, %v1949_v62 }
 0x9dc   :  { %1455 = vtanh.f32 %v657_v34  ;;  %v1357_v6 = vmul.f32 -1.442695, %v657_v34 }
 0x9e1   :  { %v655_v35 = vpop.f32.mrf.mxu0 }
 0x9e2   :  { %v1456_v36 = vpop.eup %1455 }
 0x9e3   :  { %683 = vrot.lane.b32.xlu2 %v1456_v36, %s1713_s25 }
 0x9f5   :  { %v722_v37 = vpop.f32.mrf.mxu1 }
 0x9f6   :  { %v723_v0 = vadd.f32 %v1855_v47, %v722_v37 }
 0x9f8   :  { %1457 = vtanh.f32 %v723_v0  ;;  %v1359_v19 = vmul.f32 -1.442695, %v723_v0 }
 0x9f9   :  { %1459 = vpow2.f32 %v1357_v6 }
 0x9fd   :  { %v724_v2 = vpop.f32.mrf.mxu1 }
 0x9fe   :  { %v1458_v4 = vpop.eup %1457 }
 0x9ff   :  { %748 = vrot.lane.b32.xlu0 %v1458_v4, %s1713_s25  ;;  %v1460_v5 = vpop.eup %1459 }
 0xa00   :  { %v661_v49 = vadd.f32 1.0, %v1460_v5 }
 0xa02   :  { %1461 = vrcp.f32 %v661_v49  ;;  %v673_v12 = vand.u32 2147483648, %v661_v49  ;;  %vm667_vm2 = vweird.f32 %v661_v49  ;;  %v671_v13 = vand.u32 2147483647, %v661_v49 }
 0xa03   :  { %1463 = vpow2.f32 %v1359_v19 }
 0xa04   :  { %v674_v15 = vor.u32 1.1754944e-38, %v673_v12  ;;  %vm672_vm4 = vcmp.eq.f32.partialorder %v671_v13, 8.507059e+37 }
 0xa08   :  { %v1462_v8 = vpop.eup %1461 }
 0xa09   :  { %v663_v7 = vmul.f32 %v1462_v8, %v661_v49  ;;  %vm668_vm1 = vweird.f32 %v1462_v8  ;;  %v1464_v20 = vpop.eup %1463 }
 0xa0a   :  { %vm669_vm3 = vmor %vm667_vm2, %vm668_vm1  ;;  %v729_v21 = vadd.f32 1.0, %v1464_v20 }
 0xa0b   :  { %v664_v9 = vsub.f32 1.0, %v663_v7 }
 0xa0c   :  { %1465 = vrcp.f32 %v729_v21  ;;  %v741_v28 = vand.u32 2147483648, %v729_v21  ;;  %vm735_vm8 = vweird.f32 %v729_v21  ;;  %v739_v31 = vand.u32 2147483647, %v729_v21 }
 0xa0d   :  { %v665_v10 = vmul.f32 %v1462_v8, %v664_v9 }
 0xa0e   :  { %v742_v29 = vor.u32 1.1754944e-38, %v741_v28  ;;  %vm740_vm10 = vcmp.eq.f32.partialorder %v739_v31, 8.507059e+37 }
 0xa0f   :  { %v666_v11 = vadd.f32 %v1462_v8, %v665_v10 }
 0xa11   :  { %v670_v14 = vsel %vm669_vm3, %v1462_v8, %v666_v11 }
 0xa12   :  { %v675_v17 = vsel %vm672_vm4, %v674_v15, %v670_v14  ;;  %v1466_v22 = vpop.eup %1465 }
 0xa13   :  { %v731_v23 = vmul.f32 %v1466_v22, %v729_v21  ;;  %vm736_vm7 = vweird.f32 %v1466_v22  ;;  %v681_v44 = vmul.f32 %v679_v42, %v675_v17 }
 0xa14   :  { %vm737_vm9 = vmor %vm735_vm8, %vm736_vm7 }
 0xa15   :  { %v732_v24 = vsub.f32 1.0, %v731_v23 }
 0xa17   :  { %v733_v26 = vmul.f32 %v1466_v22, %v732_v24 }
 0xa19   :  { %v734_v27 = vadd.f32 %v1466_v22, %v733_v26 }
 0xa1b   :  { %v738_v32 = vsel %vm737_vm9, %v1466_v22, %v734_v27 }
 0xa1c   :  { %v743_v39 = vsel %vm740_vm10, %v742_v29, %v738_v32 }
 0xa1d   :  { %v746_v50 = vmul.f32 %v743_v39, %v1930_v30 }
 0xa3d   :  { %v684_v16 = vpop.permute.xlu2 %683 }
 0xa3e   :  { %v686_v18 = vmul.f32 %v684_v16, %v675_v17 }
 0xa40   :  { %688 = vrot.lane.b32.xlu1 %v686_v18, %s1713_s25 }
 0xa71   :  { %v749_v33 = vpop.permute.xlu0 %748 }
 0xa72   :  { %v751_v41 = vmul.f32 %v749_v33, %v743_v39 }
 0xa74   :  { %753 = vrot.lane.b32.xlu2 %v751_v41, %s1713_s25 }
 0xab2   :  { %v689_v25 = vpop.permute.xlu1 %688 }
 0xab3   :  { %v1958_v46 = vadd.f32 %v689_v25, %v681_v44 }
 0xab5   :  { %1467 = vtanh.f32 %v1958_v46  ;;  %v813_v41 = vrot.slane %v1958_v46, 6 }
 0xabb   :  { %v1468_v48 = vpop.eup %1467 }
 0xabc   :  { %694 = vrot.lane.b32.xlu0 %v1468_v48, %s1713_s25 }
 0xace   :  { %v754_v52 = vpop.permute.xlu2 %753 }
 0xacf   :  { %v1963_v38 = vadd.f32 %v754_v52, %v746_v50 }
 0xad1   :  { %1469 = vtanh.f32 %v1963_v38 }
 0xad7   :  { %v1470_v53 = vpop.eup %1469 }
 0xad8   :  { %759 = vrot.lane.b32.xlu1 %v1470_v53, %s1713_s25 }
 0xb2e   :  { %v695_v45 = vpop.permute.xlu0 %694 }
 0xb2f   :  { %v697_v54 = vmul.f32 %v695_v45, %v675_v17 }
 0xb31   :  { %833 = vrot.lane.b32.xlu2 %v697_v54, %s1707_s13  ;;  %v768_v55 = vpack.c.bf16 %v697_v54, %v697_v54 }
 0xb33   :  { %770 = vrot.lane.b32.xlu1 %v768_v55, %s1707_s13 }
 0xb4a   :  { %v760_v56 = vpop.permute.xlu1 %759 }
 0xb4b   :  { %v1969_v43 = vmul.f32 %v760_v56, %v743_v39 }
 0xb4d   :  { %836 = vrot.lane.b32.xlu0 %v1969_v43, %s1714_s27 }
 0xb8b   :  { %v834_v58 = vpop.permute.xlu2 %833 }
 0xba5   :  { %v771_v30 = vpop.permute.xlu1 %770 }
 0xba6   :  { %1360 = vmatmul.msk.bf16.vlgmr.msra.gmra.mxu2 %vm154_vm5, %v771_v30 }
 0xbbf   :  { %v837_v1 = vpop.permute.xlu0 %836 }
 0xbc0   :  { %v839_v3 = vsel %vm154_vm5, %v834_v58, %v837_v1 }
 0xbc1   :  { %v840_v59 = vpack.c.bf16 %v839_v3, %v839_v3 }
 0xbc3   :  { %1362 = vmatmul.msk.bf16.vlgmr.msra.gmra.mxu3 %vm306_vm6, %v840_v59 }
 0xc29   :  { %v784_v60 = vpop.f32.mrf.mxu2 }
 0xc2a   :  { %v789_v61 = vrot.slane %v784_v60, 6 }
 0xc2c   :  { %v791_v63 = vadd.f32 %v789_v61, %v1949_v62 }
 0xc2e   :  { %1471 = vtanh.f32 %v791_v63  ;;  %v1361_v4 = vmul.f32 -1.442695, %v791_v63 }
 0xc31   :  { %v786_v34 = vpop.f32.mrf.mxu2 }
 0xc34   :  { %v1472_v35 = vpop.eup %1471 }
 0xc35   :  { %817 = vrot.lane.b32.xlu0 %v1472_v35, %s1713_s25 }
 0xc46   :  { %v853_v36 = vpop.f32.mrf.mxu3 }
 0xc47   :  { %v854_v37 = vadd.f32 %v1855_v47, %v853_v36 }
 0xc49   :  { %1473 = vtanh.f32 %v854_v37  ;;  %v1363_v6 = vmul.f32 -1.442695, %v854_v37 }
 0xc4a   :  { %1475 = vpow2.f32 %v1361_v4 }
 0xc4b   :  { %1477 = vpow2.f32 %v1363_v6 }
 0xc4e   :  { %v855_v0 = vpop.f32.mrf.mxu3 }
 0xc4f   :  { %v1474_v2 = vpop.eup %1473 }
 0xc50   :  { %879 = vrot.lane.b32.xlu2 %v1474_v2, %s1713_s25  ;;  %v1476_v5 = vpop.eup %1475 }
 0xc51   :  { %v1478_v49 = vpop.eup %1477  ;;  %v795_v8 = vadd.f32 1.0, %v1476_v5 }
 0xc52   :  { %v860_v7 = vadd.f32 1.0, %v1478_v49 }
 0xc53   :  { %1479 = vrcp.f32 %v795_v8  ;;  %v807_v18 = vand.u32 2147483648, %v795_v8  ;;  %vm801_vm12 = vweird.f32 %v795_v8  ;;  %v805_v19 = vand.u32 2147483647, %v795_v8 }
 0xc54   :  { %1481 = vrcp.f32 %v860_v7  ;;  %v872_v22 = vand.u32 2147483648, %v860_v7  ;;  %vm866_vm15 = vweird.f32 %v860_v7  ;;  %v870_v24 = vand.u32 2147483647, %v860_v7 }
 0xc55   :  { %v808_v23 = vor.u32 1.1754944e-38, %v807_v18  ;;  %vm806_vm0 = vcmp.eq.f32.partialorder %v805_v19, 8.507059e+37 }
 0xc56   :  { %v873_v32 = vor.u32 1.1754944e-38, %v872_v22  ;;  %vm871_vm2 = vcmp.eq.f32.partialorder %v870_v24, 8.507059e+37 }
 0xc59   :  { %v1480_v9 = vpop.eup %1479 }
 0xc5a   :  { %v1482_v10 = vpop.eup %1481  ;;  %v797_v11 = vmul.f32 %v1480_v9, %v795_v8  ;;  %vm802_vm11 = vweird.f32 %v1480_v9 }
 0xc5b   :  { %v862_v12 = vmul.f32 %v1482_v10, %v860_v7  ;;  %vm803_vm13 = vmor %vm801_vm12, %vm802_vm11  ;;  %vm867_vm14 = vweird.f32 %v1482_v10 }
 0xc5c   :  { %v798_v13 = vsub.f32 1.0, %v797_v11  ;;  %vm868_vm1 = vmor %vm866_vm15, %vm867_vm14 }
 0xc5d   :  { %v863_v14 = vsub.f32 1.0, %v862_v12 }
 0xc5e   :  { %v799_v15 = vmul.f32 %v1480_v9, %v798_v13 }
 0xc5f   :  { %v864_v16 = vmul.f32 %v1482_v10, %v863_v14 }
 0xc60   :  { %v800_v17 = vadd.f32 %v1480_v9, %v799_v15 }
 0xc61   :  { %v865_v20 = vadd.f32 %v1482_v10, %v864_v16 }
 0xc62   :  { %v804_v21 = vsel %vm803_vm13, %v1480_v9, %v800_v17 }
 0xc63   :  { %v809_v26 = vsel %vm806_vm0, %v808_v23, %v804_v21  ;;  %v869_v28 = vsel %vm868_vm1, %v1482_v10, %v865_v20 }
 0xc64   :  { %v874_v33 = vsel %vm871_vm2, %v873_v32, %v869_v28  ;;  %v815_v42 = vmul.f32 %v813_v41, %v809_v26 }
 0xc65   :  { %v877_v50 = vmul.f32 %v874_v33, %v1963_v38 }
 0xca7   :  { %v818_v27 = vpop.permute.xlu0 %817 }
 0xca8   :  { %v820_v31 = vmul.f32 %v818_v27, %v809_v26 }
 0xcaa   :  { %v880_v29 = vpop.permute.xlu2 %879  ;;  %822 = vrot.lane.b32.xlu2 %v820_v31, %s1713_s25 }
 0xcab   :  { %v882_v39 = vmul.f32 %v880_v29, %v874_v33 }
 0xcad   :  { %884 = vrot.lane.b32.xlu1 %v882_v39, %s1713_s25 }
 0xd04   :  { %v823_v44 = vpop.permute.xlu2 %822 }
 0xd05   :  { %v1983_v25 = vadd.f32 %v823_v44, %v815_v42 }
 0xd07   :  { %1483 = vtanh.f32 %v1983_v25  ;;  %v945_v44 = vrot.slane %v1983_v25, 6 }
 0xd0d   :  { %v1484_v48 = vpop.eup %1483 }
 0xd0e   :  { %828 = vrot.lane.b32.xlu1 %v1484_v48, %s1713_s25 }
 0xd1f   :  { %v885_v52 = vpop.permute.xlu1 %884 }
 0xd20   :  { %v1988_v53 = vadd.f32 %v885_v52, %v877_v50 }
 0xd22   :  { %1485 = vtanh.f32 %v1988_v53 }
 0xd28   :  { %v1486_v45 = vpop.eup %1485 }
 0xd29   :  { %890 = vrot.lane.b32.xlu0 %v1486_v45, %s1713_s25 }
 0xd80   :  { %v829_v46 = vpop.permute.xlu1 %828 }
 0xd81   :  { %v831_v54 = vmul.f32 %v829_v46, %v809_v26 }
 0xd83   :  { %965 = vrot.lane.b32.xlu2 %v831_v54, %s1707_s13  ;;  %v899_v55 = vpack.c.bf16 %v831_v54, %v831_v54 }
 0xd85   :  { %v901_v56 = vrot.slane %v899_v55, 1 }
 0xd87   :  { %902 = vrot.lane.b32.xlu1 %v901_v56, %s1707_s13 }
 0xd9b   :  { %v891_v30 = vpop.permute.xlu0 %890 }
 0xd9c   :  { %v1994_v58 = vmul.f32 %v891_v30, %v874_v33 }
 0xd9e   :  { %v968_v38 = vrot.slane %v1994_v58, 6 }
 0xda0   :  { %969 = vrot.lane.b32.xlu0 %v968_v38, %s1714_s27 }
 0xddd   :  { %v966_v3 = vpop.permute.xlu2 %965 }
 0xdf9   :  { %v903_v1 = vpop.permute.xlu1 %902 }
 0xdfa   :  { %1364 = vmatmul.msk.bf16.vlgmr.msrb.gmra.mxu0 %vm154_vm5, %v903_v1 }
 0xe12   :  { %v970_v59 = vpop.permute.xlu0 %969 }
 0xe13   :  { %v972_v60 = vsel %vm154_vm5, %v966_v3, %v970_v59 }
 0xe14   :  { %v973_v61 = vpack.c.bf16 %v972_v60, %v972_v60 }
 0xe16   :  { %v975_v63 = vrot.slane %v973_v61, 1 }
 0xe18   :  { %1366 = vmatmul.msk.bf16.vlgmr.msrb.gmra.mxu1 %vm306_vm6, %v975_v63 }
 0xe77   :  { %v916_v34 = vpop.f32.mrf.mxu0 }
 0xe78   :  { %v921_v35 = vrot.slane %v916_v34, 4 }
 0xe7a   :  { %v923_v36 = vadd.f32 %v921_v35, %v1949_v62 }
 0xe7c   :  { %1487 = vtanh.f32 %v923_v36  ;;  %v1365_v49 = vmul.f32 -1.442695, %v923_v36 }
 0xe7f   :  { %v918_v37 = vpop.f32.mrf.mxu0 }
 0xe82   :  { %v1488_v0 = vpop.eup %1487 }
 0xe83   :  { %949 = vrot.lane.b32.xlu0 %v1488_v0, %s1713_s25 }
 0xe95   :  { %v988_v2 = vpop.f32.mrf.mxu1 }
 0xe96   :  { %v989_v4 = vadd.f32 %v1855_v47, %v988_v2 }
 0xe98   :  { %1489 = vtanh.f32 %v989_v4  ;;  %v1367_v8 = vmul.f32 -1.442695, %v989_v4 }
 0xe99   :  { %1491 = vpow2.f32 %v1365_v49  ;;  %v2031_v49 = vld [vmem:[%s2099_s5] ss:$0 sm:$0xff]  ;;  %s1715_s5 = smov [#allocation11]  }
 0xe9a   :  { %1493 = vpow2.f32 %v1367_v8  ;;  %s1271_s30 = sshll.u32 %s1715_s5, 4  ;;  %s1272_s30 = int_to_ptr.vmem [resolvable:$true] %s1271_s30 }
 0xe9d   :  { %v990_v6 = vpop.f32.mrf.mxu1 }
 0xe9e   :  { %v1490_v5 = vpop.eup %1489 }
 0xe9f   :  { %1014 = vrot.lane.b32.xlu2 %v1490_v5, %s1713_s25  ;;  %v1492_v7 = vpop.eup %1491 }
 0xea0   :  { %v927_v9 = vadd.f32 1.0, %v1492_v7  ;;  %v1494_v10 = vpop.eup %1493 }
 0xea1   :  { %v995_v11 = vadd.f32 1.0, %v1494_v10 }
 0xea2   :  { %1495 = vrcp.f32 %v927_v9  ;;  %v939_v20 = vand.u32 2147483648, %v927_v9  ;;  %vm933_vm4 = vweird.f32 %v927_v9  ;;  %v937_v21 = vand.u32 2147483647, %v927_v9 }
 0xea3   :  { %1497 = vrcp.f32 %v995_v11  ;;  %v1007_v26 = vand.u32 2147483648, %v995_v11  ;;  %vm1001_vm10 = vweird.f32 %v995_v11  ;;  %v1005_v27 = vand.u32 2147483647, %v995_v11 }
 0xea4   :  { %v940_v24 = vor.u32 1.1754944e-38, %v939_v20  ;;  %vm938_vm9 = vcmp.eq.f32.partialorder %v937_v21, 8.507059e+37 }
 0xea5   :  { %v1008_v33 = vor.u32 1.1754944e-38, %v1007_v26  ;;  %vm1006_vm12 = vcmp.eq.f32.partialorder %v1005_v27, 8.507059e+37 }
 0xea8   :  { %v1496_v12 = vpop.eup %1495 }
 0xea9   :  { %v929_v13 = vmul.f32 %v1496_v12, %v927_v9  ;;  %v1498_v14 = vpop.eup %1497  ;;  %vm934_vm3 = vweird.f32 %v1496_v12 }
 0xeaa   :  { %v997_v47 = vmul.f32 %v1498_v14, %v995_v11  ;;  %vm935_vm7 = vmor %vm933_vm4, %vm934_vm3  ;;  %vm1002_vm8 = vweird.f32 %v1498_v14 }
 0xeab   :  { %v930_v15 = vsub.f32 1.0, %v929_v13  ;;  %vm1003_vm11 = vmor %vm1001_vm10, %vm1002_vm8  ;;  %vm364_vm10 = vcmask 254976  }
 0xeac   :  { %v998_v17 = vsub.f32 1.0, %v997_v47 }
 0xead   :  { %v931_v16 = vmul.f32 %v1496_v12, %v930_v15 }
 0xeae   :  { %v999_v19 = vmul.f32 %v1498_v14, %v998_v17 }
 0xeaf   :  { %v932_v18 = vadd.f32 %v1496_v12, %v931_v16 }
 0xeb0   :  { %v1000_v23 = vadd.f32 %v1498_v14, %v999_v19 }
 0xeb1   :  { %v936_v22 = vsel %vm935_vm7, %v1496_v12, %v932_v18  ;;  %vm1239_vm7 = vcmask 261126  }
 0xeb2   :  { %v941_v31 = vsel %vm938_vm9, %v940_v24, %v936_v22  ;;  %v1004_v29 = vsel %vm1003_vm11, %v1498_v14, %v1000_v23 }
 0xeb3   :  { %v1009_v41 = vsel %vm1006_vm12, %v1008_v33, %v1004_v29  ;;  %v947_v48 = vmul.f32 %v945_v44, %v941_v31 }
 0xeb4   :  { %v1012_v46 = vmul.f32 %v1009_v41, %v1988_v53 }
 0xef5   :  { %v950_v28 = vpop.permute.xlu0 %949 }
 0xef6   :  { %v952_v32 = vmul.f32 %v950_v28, %v941_v31 }
 0xef8   :  { %954 = vrot.lane.b32.xlu2 %v952_v32, %s1713_s25 }
 0xef9   :  { %v1015_v39 = vpop.permute.xlu2 %1014 }
 0xefa   :  { %v1017_v42 = vmul.f32 %v1015_v39, %v1009_v41 }
 0xefc   :  { %1019 = vrot.lane.b32.xlu1 %v1017_v42, %s1713_s25 }
 0xf52   :  { %v955_v50 = vpop.permute.xlu2 %954 }
 0xf53   :  { %v2008_v52 = vadd.f32 %v955_v50, %v947_v48 }
 0xf55   :  { %1499 = vtanh.f32 %v2008_v52 }
 0xf5b   :  { %v1500_v45 = vpop.eup %1499 }
 0xf5c   :  { %960 = vrot.lane.b32.xlu1 %v1500_v45, %s1713_s25  ;;  %v1080_v45 = vrot.slane %v2008_v52, 6 }
 0xf6e   :  { %v1020_v54 = vpop.permute.xlu1 %1019 }
 0xf6f   :  { %v2013_v55 = vadd.f32 %v1020_v54, %v1012_v46 }
 0xf71   :  { %1501 = vtanh.f32 %v2013_v55 }
 0xf77   :  { %v1502_v56 = vpop.eup %1501 }
 0xf78   :  { %1025 = vrot.lane.b32.xlu0 %v1502_v56, %s1713_s25 }
 0xfce   :  { %v961_v25 = vpop.permute.xlu1 %960 }
 0xfcf   :  { %v963_v30 = vmul.f32 %v961_v25, %v941_v31 }
 0xfd1   :  { %1100 = vrot.lane.b32.xlu2 %v963_v30, %s1707_s13  ;;  %v1034_v38 = vpack.c.bf16 %v963_v30, %v963_v30 }
 0xfd3   :  { %v1036_v1 = vrot.slane %v1034_v38, 2 }
 0xfd5   :  { %1037 = vrot.lane.b32.xlu1 %v1036_v1, %s1707_s13 }
 0xfea   :  { %v1026_v3 = vpop.permute.xlu0 %1025 }
 0xfeb   :  { %v2019_v59 = vmul.f32 %v1026_v3, %v1009_v41 }
 0xfed   :  { %v1103_v53 = vrot.slane %v2019_v59, 4 }
 0xfef   :  { %1104 = vrot.lane.b32.xlu0 %v1103_v53, %s1714_s27 }
0x102b   :  { %v1101_v61 = vpop.permute.xlu2 %1100 }
0x1047   :  { %v1038_v60 = vpop.permute.xlu1 %1037 }
0x1048   :  { %1368 = vmatmul.msk.bf16.vlgmr.msrb.gmra.mxu2 %vm154_vm5, %v1038_v60 }
0x1061   :  { %v1105_v63 = vpop.permute.xlu0 %1104 }
0x1062   :  { %v1107_v34 = vsel %vm154_vm5, %v1101_v61, %v1105_v63 }
0x1063   :  { %v1108_v35 = vpack.c.bf16 %v1107_v34, %v1107_v34 }
0x1065   :  { %v1110_v36 = vrot.slane %v1108_v35, 2 }
0x1067   :  { %1370 = vmatmul.msk.bf16.vlgmr.msrb.gmra.mxu3 %vm306_vm6, %v1110_v36 }
0x10cb   :  { %v1051_v37 = vpop.f32.mrf.mxu2 }
0x10cc   :  { %v1056_v0 = vrot.slane %v1051_v37, 2 }
0x10ce   :  { %v1058_v2 = vadd.f32 %v1056_v0, %v1949_v62 }
0x10d0   :  { %1503 = vtanh.f32 %v1058_v2  ;;  %v1369_v10 = vmul.f32 -1.442695, %v1058_v2 }
0x10d3   :  { %v1053_v4 = vpop.f32.mrf.mxu2 }
0x10d6   :  { %v1504_v6 = vpop.eup %1503 }
0x10d7   :  { %1084 = vrot.lane.b32.xlu0 %v1504_v6, %s1713_s25 }
0x10ea   :  { %v1123_v5 = vpop.f32.mrf.mxu3 }
0x10eb   :  { %v1124_v8 = vadd.f32 %v2031_v49, %v1123_v5 }
0x10ed   :  { %1505 = vtanh.f32 %v1124_v8  ;;  %v1371_v62 = vmul.f32 -1.442695, %v1124_v8 }
0x10ee   :  { %1507 = vpow2.f32 %v1369_v10 }
0x10ef   :  { %1509 = vpow2.f32 %v1371_v62 }
0x10f2   :  { %v1125_v7 = vpop.f32.mrf.mxu3 }
0x10f3   :  { %v1506_v9 = vpop.eup %1505 }
0x10f4   :  { %1149 = vrot.lane.b32.xlu2 %v1506_v9, %s1713_s25  ;;  %v1508_v11 = vpop.eup %1507 }
0x10f5   :  { %v1062_v12 = vadd.f32 1.0, %v1508_v11  ;;  %v1510_v13 = vpop.eup %1509 }
0x10f6   :  { %v1130_v14 = vadd.f32 1.0, %v1510_v13 }
0x10f7   :  { %1511 = vrcp.f32 %v1062_v12  ;;  %v1074_v22 = vand.u32 2147483648, %v1062_v12  ;;  %vm1068_vm14 = vweird.f32 %v1062_v12  ;;  %v1072_v24 = vand.u32 2147483647, %v1062_v12 }
0x10f8   :  { %1513 = vrcp.f32 %v1130_v14  ;;  %v1142_v31 = vand.u32 2147483648, %v1130_v14  ;;  %vm1136_vm2 = vweird.f32 %v1130_v14  ;;  %v1140_v33 = vand.u32 2147483647, %v1130_v14 }
0x10f9   :  { %v1075_v27 = vor.u32 1.1754944e-38, %v1074_v22  ;;  %vm1073_vm1 = vcmp.eq.f32.partialorder %v1072_v24, 8.507059e+37 }
0x10fa   :  { %v1143_v42 = vor.u32 1.1754944e-38, %v1142_v31  ;;  %vm1141_vm4 = vcmp.eq.f32.partialorder %v1140_v33, 8.507059e+37 }
0x10fd   :  { %v1512_v15 = vpop.eup %1511 }
0x10fe   :  { %v1064_v47 = vmul.f32 %v1512_v15, %v1062_v12  ;;  %v1514_v16 = vpop.eup %1513  ;;  %vm1069_vm13 = vweird.f32 %v1512_v15 }
0x10ff   :  { %v1132_v18 = vmul.f32 %v1514_v16, %v1130_v14  ;;  %vm1070_vm15 = vmor %vm1068_vm14, %vm1069_vm13  ;;  %vm1137_vm0 = vweird.f32 %v1514_v16 }
0x1100   :  { %v1065_v17 = vsub.f32 1.0, %v1064_v47  ;;  %vm1138_vm3 = vmor %vm1136_vm2, %vm1137_vm0 }
0x1101   :  { %v1133_v20 = vsub.f32 1.0, %v1132_v18 }
0x1102   :  { %v1066_v19 = vmul.f32 %v1512_v15, %v1065_v17 }
0x1103   :  { %v1134_v23 = vmul.f32 %v1514_v16, %v1133_v20 }
0x1104   :  { %v1067_v21 = vadd.f32 %v1512_v15, %v1066_v19 }
0x1105   :  { %v1135_v28 = vadd.f32 %v1514_v16, %v1134_v23 }
0x1106   :  { %v1071_v26 = vsel %vm1070_vm15, %v1512_v15, %v1067_v21 }
0x1107   :  { %v1076_v29 = vsel %vm1073_vm1, %v1075_v27, %v1071_v26  ;;  %v1139_v41 = vsel %vm1138_vm3, %v1514_v16, %v1135_v28 }
0x1108   :  { %v1144_v48 = vsel %vm1141_vm4, %v1143_v42, %v1139_v41  ;;  %v1082_v46 = vmul.f32 %v1080_v45, %v1076_v29 }
0x1109   :  { %v1147_v30 = vmul.f32 %v1144_v48, %v2013_v55 }
0x1149   :  { %v1085_v32 = vpop.permute.xlu0 %1084 }
0x114a   :  { %v1087_v39 = vmul.f32 %v1085_v32, %v1076_v29 }
0x114c   :  { %1089 = vrot.lane.b32.xlu2 %v1087_v39, %s1713_s25 }
0x114e   :  { %v1150_v44 = vpop.permute.xlu2 %1149 }
0x114f   :  { %v1152_v50 = vmul.f32 %v1150_v44, %v1144_v48 }
0x1151   :  { %1154 = vrot.lane.b32.xlu1 %v1152_v50, %s1713_s25 }
0x11a6   :  { %v1090_v54 = vpop.permute.xlu2 %1089 }
0x11a7   :  { %v2038_v56 = vadd.f32 %v1090_v54, %v1082_v46 }
0x11a9   :  { %1515 = vtanh.f32 %v2038_v56 }
0x11af   :  { %v1516_v25 = vpop.eup %1515 }
0x11b0   :  { %1095 = vrot.lane.b32.xlu1 %v1516_v25, %s1713_s25 }
0x11c3   :  { %v1155_v38 = vpop.permute.xlu1 %1154 }
0x11c4   :  { %v1157_v1 = vadd.f32 %v1155_v38, %v1147_v30 }
0x11c6   :  { %1517 = vtanh.f32 %v1157_v1 }
0x11cc   :  { %v1518_v3 = vpop.eup %1517 }
0x11cd   :  { %1160 = vrot.lane.b32.xlu0 %v1518_v3, %s1713_s25 }
0x1222   :  { %v1096_v53 = vpop.permute.xlu1 %1095 }
0x1223   :  { %v1098_v60 = vmul.f32 %v1096_v53, %v1076_v29 }
0x1225   :  { %1170 = vrot.lane.b32.xlu2 %v1098_v60, %s1707_s13 }
0x123f   :  { %v1161_v52 = vpop.permute.xlu0 %1160 }
0x1240   :  { %v1163_v61 = vmul.f32 %v1161_v52, %v1144_v48 }
0x1242   :  { %v1173_v63 = vrot.slane %v1163_v61, 2 }
0x1244   :  { %1174 = vrot.lane.b32.xlu0 %v1173_v63, %s1714_s27 }
0x127f   :  { %v1171_v34 = vpop.permute.xlu2 %1170 }
0x1280   :  { %1240 = vst.msk [vmem:[#allocation11 - $0x6] sm:$0xc0] %vm1239_vm7, %v1171_v34 }
0x12b6   :  { %v1175_v55 = vpop.permute.xlu0 %1174 }
0x12b7   :  { %v1177_v35 = vsel %vm154_vm5, %v1171_v34, %v1175_v55 }
0x12b8   :  { %v1178_v36 = vpack.c.bf16 %v1177_v35, %v1177_v35 }
0x12ba   :  { %v1180_v37 = vrot.slane %v1178_v36, 3 }
0x12bc   :  { %1372 = vmatmul.msk.bf16.vlgmr.msra.gmra.mxu0 %vm306_vm6, %v1180_v37 }
0x1339   :  { %v1193_v0 = vpop.f32.mrf.mxu0 }
0x133a   :  { %v1194_v2 = vadd.f32 %v2031_v49, %v1193_v0 }
0x133c   :  { %1519 = vtanh.f32 %v1194_v2  ;;  %v1373_v5 = vmul.f32 -1.442695, %v1194_v2 }
0x133e   :  { %1521 = vpow2.f32 %v1373_v5 }
0x1341   :  { %v1195_v4 = vpop.f32.mrf.mxu0 }
0x1342   :  { %v1520_v6 = vpop.eup %1519 }
0x1343   :  { %1219 = vrot.lane.b32.xlu1 %v1520_v6, %s1713_s25 }
0x1344   :  { %v1522_v8 = vpop.eup %1521 }
0x1345   :  { %v1200_v7 = vadd.f32 1.0, %v1522_v8 }
0x1347   :  { %1523 = vrcp.f32 %v1200_v7  ;;  %v1212_v12 = vand.u32 2147483648, %v1200_v7  ;;  %vm1206_vm6 = vweird.f32 %v1200_v7  ;;  %v1210_v13 = vand.u32 2147483647, %v1200_v7 }
0x1349   :  { %vm1211_vm9 = vcmp.eq.f32.partialorder %v1210_v13, 8.507059e+37 }
0x134b   :  { %632 = vrot.lane.b32.xlu1 %v1936_v57, %s1707_s13  ;;  %v1213_v57 = vor.u32 1.1754944e-38, %v1212_v12 }
0x134d   :  { %v1524_v9 = vpop.eup %1523 }
0x134e   :  { %v1202_v10 = vmul.f32 %v1524_v9, %v1200_v7  ;;  %vm1207_vm5 = vweird.f32 %v1524_v9 }
0x134f   :  { %vm1208_vm8 = vmor %vm1206_vm6, %vm1207_vm5 }
0x1350   :  { %v1203_v62 = vsub.f32 1.0, %v1202_v10 }
0x1352   :  { %v1204_v49 = vmul.f32 %v1524_v9, %v1203_v62 }
0x1353   :  { %1030 = vrot.lane.b32.xlu1 %v2019_v59, %s1707_s13 }
0x1354   :  { %v1205_v11 = vadd.f32 %v1524_v9, %v1204_v49 }
0x1356   :  { %v1209_v14 = vsel %vm1208_vm8, %v1524_v9, %v1205_v11 }
0x1357   :  { %v1214_v59 = vsel %vm1211_vm9, %v1213_v57, %v1209_v14 }
0x1358   :  { %v1217_v18 = vmul.f32 %v1214_v59, %v1157_v1 }
0x13b5   :  { %v1220_v15 = vpop.permute.xlu1 %1219 }
0x13b6   :  { %v1222_v47 = vmul.f32 %v1220_v15, %v1214_v59 }
0x13b8   :  { %1224 = vrot.lane.b32.xlu2 %v1222_v47, %s1713_s25 }
0x13bd   :  { %v633_v16 = vpop.permute.xlu1 %632 }
0x13be   :  { %635 = vst.msk [vmem:[#allocation10 + $0x4] sm:$0x3] %vm364_vm10, %v633_v16 }
0x13c0   :  { %361 = vrot.lane.b32.xlu2 %v1872_v40, %s1707_s13 }
0x13c5   :  { %v1031_v17 = vpop.permute.xlu1 %1030 }
0x13c6   :  { %1033 = vst.msk [vmem:[#allocation10 + $0xa] sm:$0x3] %vm364_vm10, %v1031_v17 }
0x13c8   :  { %764 = vrot.lane.b32.xlu2 %v1969_v43, %s1707_s13 }
0x13d0   :  { %1165 = vrot.lane.b32.xlu2 %v1163_v61, %s1707_s13 }
0x1412   :  { %v1225_v19 = vpop.permute.xlu2 %1224 }
0x1413   :  { %v1227_v20 = vadd.f32 %v1225_v19, %v1217_v18 }
0x1415   :  { %1525 = vtanh.f32 %v1227_v20 }
0x141a   :  { %v362_v21 = vpop.permute.xlu2 %361 }
0x141b   :  { %v1526_v22 = vpop.eup %1525  ;;  %365 = vst.msk [vmem:[#allocation10] sm:$0x3] %vm364_vm10, %v362_v21 }
0x141c   :  { %1230 = vrot.lane.b32.xlu0 %v1526_v22, %s1713_s25 }
0x1422   :  { %v765_v23 = vpop.permute.xlu2 %764 }
0x1423   :  { %767 = vst.msk [vmem:[#allocation10 + $0x6] sm:$0x3] %vm364_vm10, %v765_v23 }
0x1424   :  { %497 = vrot.lane.b32.xlu0 %v1905_v51, %s1707_s13 }
0x142a   :  { %v1166_v40 = vpop.permute.xlu2 %1165 }
0x142b   :  { %1168 = vst.msk [vmem:[#allocation10 + $0xc] sm:$0x3] %vm364_vm10, %v1166_v40 }
0x142c   :  { %895 = vrot.lane.b32.xlu0 %v1994_v58, %s1707_s13 }
0x1434   :  { %1242 = vrot.lane.b32.xlu0 %v2038_v56, %s1714_s27 }
0x148e   :  { %v1231_v43 = vpop.permute.xlu0 %1230 }
0x148f   :  { %v1233_v24 = vmul.f32 %v1231_v43, %v1214_v59 }
0x1491   :  { %1235 = vrot.lane.b32.xlu1 %v1233_v24, %s1707_s13 }
0x1496   :  { %v498_v26 = vpop.permute.xlu0 %497 }
0x1497   :  { %500 = vst.msk [vmem:[#allocation10 + $0x2] sm:$0x3] %vm364_vm10, %v498_v26 }
0x1499   :  { %1249 = vrot.lane.b32.xlu1 %v1227_v20, %s1714_s27 }
0x149e   :  { %v896_v27 = vpop.permute.xlu0 %895 }
0x149f   :  { %898 = vst.msk [vmem:[#allocation10 + $0x8] sm:$0x3] %vm364_vm10, %v896_v27 }
0x14a6   :  { %v1243_v51 = vpop.permute.xlu0 %1242 }
0x14a7   :  { %1245 = vst.msk [vmem:[#allocation13 - $0x6] sm:$0xc0] %vm1239_vm7, %v1243_v51 }
0x1503   :  { %v1236_v58 = vpop.permute.xlu1 %1235 }
0x1504   :  { %1238 = vst.msk [vmem:[#allocation10 + $0xe] sm:$0x3] %vm364_vm10, %v1236_v58 }
0x1505   :  { %1247 = vst.msk [vmem:[#allocation11 + $0x2] sm:$0x3] %vm364_vm10, %v1236_v58  ;;  %1266 = dma.vmem_to_hbm [thread:$0]  %s1259_s10, 256, %s1261_s14, [#allocation4], %s1717_s17, %s1717_s17, %s1718_s18  }
0x1506   :  { %1279 = dma.vmem_to_hbm [thread:$0]  %s1272_s30, 64, %s1274_s16, [#allocation12], %s1713_s25, %s1713_s25, %s1719_s1  }
0x150b   :  { %v1250_v28 = vpop.permute.xlu1 %1249 }
0x150c   :  { %1253 = vst.msk [vmem:[#allocation13 + $0x2] sm:$0x3] %vm364_vm10, %v1250_v28 }
0x150d   :  { %1292 = dma.vmem_to_hbm [thread:$0]  %s1285_s19, 64, %s1287_s7, [#allocation12], %s1713_s25, %s1713_s25, %s1719_s1  }
0x150e   :  { %1702 = dma.done.wait [#allocation4], 256  }
0x150f   :  { %1703 = vsyncadd [#allocation4], 4294967040 }
0x1510   :  { %1704 = dma.done.wait [#allocation12], 128  }
0x1511   :  { %1705 = vsyncadd [#allocation12], 4294967168 }
0x1512   :  { %1305 = vsyncpa [#allocation3], 1 }
0x1513   :  { %1306 = vsyncpa [#allocation6], 1 }
0x1514   :  { %1307 = vsyncpa [#allocation9], 1 }
0x1515   :  { %1308 = vsyncpa [#allocation4], 1 }
0x1516   :  { %1309 = vsyncpa [#allocation12], 1 }

</bundles_post_ra>
